<compile_context>
chip_gen: v5e
topology: v5e:2x2
jax: 0.10.0
libtpu: 0.0.40
codegen_flags: <defaults>
</compile_context>

<pallas_src>
import functools
import math

import jax
import jax.numpy as jnp
from jax.experimental import pallas as pl
from jax.experimental.pallas import tpu as pltpu

NUM_GROUPS = 32     # nn.GroupNorm(32, out_channels)
GN_EPS = 1e-5       # PyTorch GroupNorm default eps


# ---------------------------------------------------------------------------
# In-kernel helpers
# ---------------------------------------------------------------------------
def _zero_border(pad_ref):
    """Keep the 1-pixel spatial border of a (BB, Hp+2, Wp+2, C) scratch zero.

    The interior is fully overwritten every grid step, so only the border has
    to be (re)zeroed; doing it every step keeps the kernel correct even when
    the batch grid axis is sharded across TensorCores ("parallel")."""
    bb, hp2, wp2, c = pad_ref.shape
    z_row = jnp.zeros((bb, 1, wp2, c), jnp.float32)
    z_col = jnp.zeros((bb, hp2, 1, c), jnp.float32)
    pad_ref[:, pl.ds(0, 1), :, :] = z_row
    pad_ref[:, pl.ds(hp2 - 1, 1), :, :] = z_row
    pad_ref[:, :, pl.ds(0, 1), :] = z_col
    pad_ref[:, :, pl.ds(wp2 - 1, 1), :] = z_col


def _conv3x3(xpad, w_ref, b_ref):
    """3x3 'SAME' conv as 3 accumulating MXU dots (chunked over ky).

    xpad : (BB, Hp+2, Wp+2, C) zero-padded activation (f32 value).
    w_ref: (3, 3*C, Cout) bf16 ref; within each ky the rows are (kx, c).
    b_ref: (1, Cout) f32 ref.
    Returns (BB*Hp*Wp, Cout) f32.
    """
    bb, hp2, wp2, c = xpad.shape
    hp, wp = hp2 - 2, wp2 - 2
    m = bb * hp * wp
    cout = w_ref.shape[2]

    # kx shifts concatenated on lanes; cast to bf16 only at the MXU boundary
    # (halves the footprint of this tile; f32 accumulation below).
    catx = jnp.concatenate(
        [xpad[:, :, kx:kx + wp, :].astype(jnp.bfloat16) for kx in range(3)],
        axis=-1)                                    # (BB, Hp+2, Wp, 3C) bf16

    acc = jnp.zeros((m, cout), jnp.float32)
    for ky in range(3):                             # K = 3*C per dot
        lhs = catx[:, ky:ky + hp].reshape(m, 3 * c)
        acc = acc + jnp.dot(lhs, w_ref[ky],
                            preferred_element_type=jnp.float32)
    return acc + b_ref[...]


def _groupnorm_relu(y, gamma, beta, bb, hw, num_groups):
    """GroupNorm(num_groups) + ReLU on a (bb*hw, C) tile; per-sample stats.

    Fast path for group_size == 1 (this config): pure VPU/XLU reductions over
    the spatial axis, no MXU on the critical path."""
    m, c = y.shape
    gsize = c // num_groups
    y3 = y.reshape(bb, hw, c)                       # split leading dim only

    if gsize == 1:
        mean = jnp.mean(y3, axis=1, keepdims=True)              # (bb, 1, C)
        cen = y3 - mean
        var = jnp.mean(cen * cen, axis=1, keepdims=True)        # (bb, 1, C)
        inv = jax.lax.rsqrt(var + GN_EPS)
    else:
        # General path: per-channel spatial sums pooled across each group's
        # channels with one small block-diagonal (C, C) dot per statistic.
        gmat = (jax.lax.broadcasted_iota(jnp.int32, (c, c), 0) // gsize
                == jax.lax.broadcasted_iota(jnp.int32, (c, c), 1) // gsize
                ).astype(jnp.float32)
        denom = 1.0 / float(hw * gsize)
        s = jnp.sum(y3, axis=1, keepdims=True)                  # (bb, 1, C)
        mean = (jnp.dot(s[:, 0, :], gmat,
                        preferred_element_type=jnp.float32) * denom)[:, None, :]
        cen = y3 - mean
        q = jnp.sum(cen * cen, axis=1, keepdims=True)
        var = (jnp.dot(q[:, 0, :], gmat,
                       preferred_element_type=jnp.float32) * denom)[:, None, :]
        inv = jax.lax.rsqrt(var + GN_EPS)

    out = jnp.maximum(cen * inv * gamma + beta, 0.0)            # (bb, hw, C)
    return out.reshape(m, c)


def _encoder_kernel(x_ref, w1_ref, b1_ref, g1_ref, be1_ref,
                    w2_ref, b2_ref, g2_ref, be2_ref,
                    out_ref, pad1_ref, pad2_ref, *, pool):
    # x_ref : (BB, Hp, 2, Wp, 2*Cin) if pool else (BB, Hp, 1, Wp, Cin)
    # w*_ref: (3, 3*Cin, Cout) / (3, 3*Cout, Cout) bf16; b*/g*/be*: (1, Cout) f32
    # out_ref: (BB*Hp*Wp, Cout)  -- same layout as the conv2/GN result, so the
    #          epilogue has zero relayout work.
    bb = pad1_ref.shape[0]
    hp = pad1_ref.shape[1] - 2
    wp = pad1_ref.shape[2] - 2
    cin = pad1_ref.shape[3]
    cout = pad2_ref.shape[3]
    hw = hp * wp

    # ---- fused MaxPool2d(2, 2) (f32 VPU max) ----
    x = x_ref[...].astype(jnp.float32)
    if pool:
        hmax = jnp.maximum(x[:, :, 0], x[:, :, 1])              # (BB,Hp,Wp,2Cin)
        pooled = jnp.maximum(hmax[..., :cin], hmax[..., cin:])  # (BB,Hp,Wp,Cin)
    else:
        pooled = x[:, :, 0]                                     # (BB,Hp,Wp,Cin)

    # ---- Conv2d(Cin -> Cout, 3x3, pad=1): pad scratch + 3 chunked-K dots ----
    _zero_border(pad1_ref)
    pad1_ref[:, pl.ds(1, hp), pl.ds(1, wp), :] = pooled
    acc1 = _conv3x3(pad1_ref[...], w1_ref, b1_ref)              # (M, Cout) f32
    y1 = _groupnorm_relu(acc1, g1_ref[...], be1_ref[...], bb, hw, NUM_GROUPS)

    # ---- Conv2d(Cout -> Cout, 3x3, pad=1) ----
    _zero_border(pad2_ref)
    pad2_ref[:, pl.ds(1, hp), pl.ds(1, wp), :] = y1.reshape(bb, hp, wp, cout)
    acc2 = _conv3x3(pad2_ref[...], w2_ref, b2_ref)              # (M, Cout) f32
    y2 = _groupnorm_relu(acc2, g2_ref[...], be2_ref[...], bb, hw, NUM_GROUPS)

    # ---- writeback: no relayout, (M, Cout) stored as-is ----
    out_ref[...] = y2.astype(out_ref.dtype)
    # TODO(synk): dropout=True (nn.Dropout) and bn=True (nn.InstanceNorm2d)
    #             branches of the module are not implemented (defaults used).


# ---------------------------------------------------------------------------
# Wrapper: full _EncoderBlock forward (single pallas_call)
# ---------------------------------------------------------------------------
def encoder_block(x, params, polling=True):
    """x: (N, H, W, Cin) float32 NHWC.  Returns (N, H', W', Cout)."""
    n, h, w, cin = x.shape
    cout = params["w1"].shape[-1]
    if polling:
        assert h % 2 == 0 and w % 2 == 0, "MaxPool2d(2,2) path needs even H, W"
        hp, wp = h // 2, w // 2
        x5 = x.reshape(n, hp, 2, wp, 2 * cin)   # free contiguous reshape
    else:
        hp, wp = h, w
        x5 = x.reshape(n, hp, 1, wp, cin)
    hw = hp * wp

    # Batch folding: fill the MXU M axis (rows per step) up to MAX_ROWS, but
    # keep >= 2 grid steps so "parallel" can shard across v7x's 2 TensorCores.
    # (At production H/W/C, re-derive this cap against v7x's 64 MiB VMEM.)
    max_rows = 4096
    min_steps = 2 if n >= 2 else 1
    bb = 1
    for d in range(1, n + 1):
        if n % d == 0 and d * hw <= max_rows and n // d >= min_steps:
            bb = d

    # bf16 weights (MXU operands); biases / GN affine stay f32.
    w1 = params["w1"].reshape(3, 3 * cin, cout).astype(jnp.bfloat16)
    w2 = params["w2"].reshape(3, 3 * cout, cout).astype(jnp.bfloat16)
    b1 = params["b1"].reshape(1, cout).astype(jnp.float32)
    b2 = params["b2"].reshape(1, cout).astype(jnp.float32)
    g1 = params["g1"].reshape(1, cout).astype(jnp.float32)
    be1 = params["be1"].reshape(1, cout).astype(jnp.float32)
    g2 = params["g2"].reshape(1, cout).astype(jnp.float32)
    be2 = params["be2"].reshape(1, cout).astype(jnp.float32)

    vec_spec = pl.BlockSpec((1, cout), lambda i: (0, 0))
    out = pl.pallas_call(
        functools.partial(_encoder_kernel, pool=polling),
        out_shape=jax.ShapeDtypeStruct((n * hw, cout), jnp.float32),
        grid=(n // bb,),
        in_specs=[
            pl.BlockSpec((bb,) + tuple(x5.shape[1:]),
                         lambda i: (i, 0, 0, 0, 0)),
            pl.BlockSpec(w1.shape, lambda i: (0, 0, 0)),
            vec_spec, vec_spec, vec_spec,
            pl.BlockSpec(w2.shape, lambda i: (0, 0, 0)),
            vec_spec, vec_spec, vec_spec,
        ],
        out_specs=pl.BlockSpec((bb * hw, cout), lambda i: (i, 0)),
        scratch_shapes=[
            pltpu.VMEM((bb, hp + 2, wp + 2, cin), jnp.float32),
            pltpu.VMEM((bb, hp + 2, wp + 2, cout), jnp.float32),
        ],
        compiler_params=pltpu.CompilerParams(
            dimension_semantics=("parallel",),      # v7x: batch over 2 TCs
            vmem_limit_bytes=64 * 1024 * 1024),
    )(x5, w1, b1, g1, be1, w2, b2, g2, be2)

    return out.reshape(n, hp, wp, cout)


# ---------------------------------------------------------------------------
# Deterministic parameter init + pure-JAX reference (for verification)
# ---------------------------------------------------------------------------
def init_params(key, cin, cout):
    ks = jax.random.split(key, 8)
    return dict(
        w1=jax.random.normal(ks[0], (3, 3, cin, cout), jnp.float32) / math.sqrt(9 * cin),
        b1=0.1 * jax.random.normal(ks[1], (cout,), jnp.float32),
        g1=1.0 + 0.1 * jax.random.normal(ks[2], (cout,), jnp.float32),
        be1=0.1 * jax.random.normal(ks[3], (cout,), jnp.float32),
        w2=jax.random.normal(ks[4], (3, 3, cout, cout), jnp.float32) / math.sqrt(9 * cout),
        b2=0.1 * jax.random.normal(ks[5], (cout,), jnp.float32),
        g2=1.0 + 0.1 * jax.random.normal(ks[6], (cout,), jnp.float32),
        be2=0.1 * jax.random.normal(ks[7], (cout,), jnp.float32),
    )


def ref_forward(x, p, polling=True):
    if polling:
        x = jax.lax.reduce_window(x, -jnp.inf, jax.lax.max,
                                  (1, 2, 2, 1), (1, 2, 2, 1), "VALID")

    def conv(x, w, b):
        y = jax.lax.conv_general_dilated(
            x, w, window_strides=(1, 1), padding="SAME",
            dimension_numbers=("NHWC", "HWIO", "NHWC"),
            precision=jax.lax.Precision.HIGHEST)
        return y + b

    def gn_relu(x, gamma, beta, groups=NUM_GROUPS, eps=GN_EPS):
        n, h, w, c = x.shape
        xg = x.reshape(n, h, w, groups, c // groups)
        mean = xg.mean(axis=(1, 2, 4), keepdims=True)
        var = ((xg - mean) ** 2).mean(axis=(1, 2, 4), keepdims=True)
        y = ((xg - mean) / jnp.sqrt(var + eps)).reshape(n, h, w, c)
        return jnp.maximum(y * gamma + beta, 0.0)

    x = gn_relu(conv(x, p["w1"], p["b1"]), p["g1"], p["be1"])
    x = gn_relu(conv(x, p["w2"], p["b2"]), p["g2"], p["be2"])
    return x


if __name__ == "__main__":
    key = jax.random.PRNGKey(0)
    kx, kp = jax.random.split(key)

    N, Cin, Himg, Wimg = 2, 4, 16, 16
    Cout = 32   # GroupNorm(32, out_channels) requires out_channels % 32 == 0

    x_nchw = jax.random.normal(kx, (N, Cin, Himg, Wimg), jnp.float32)  # PyTorch NCHW
    x = jnp.transpose(x_nchw, (0, 2, 3, 1))                            # -> NHWC
    params = init_params(kp, Cin, Cout)

    out = jax.block_until_ready(encoder_block(x, params, polling=True))
    assert out.shape == (N, Himg // 2, Wimg // 2, Cout), out.shape

    ref = ref_forward(x, params, polling=True)
    max_err = float(jnp.max(jnp.abs(out - ref)))
    # Tolerance covers bf16 MXU operands (f32 accumulation / f32 GN math).
    if not bool(jnp.allclose(out, ref, rtol=2e-2, atol=2e-2)):
        raise AssertionError(f"Pallas output mismatch vs reference (max abs err {max_err})")

    print("KERNEL_OK")
</pallas_src>

<mosaic_0001>
module attributes {stable_mosaic.version = 11 : i64} {
  func.func @_encoder_kernel(%arg0: i32, %arg1: memref<1x8x2x8x8xf32, #tpu.memory_space<vmem>>, %arg2: memref<3x12x32xbf16, #tpu.memory_space<vmem>>, %arg3: memref<1x32xf32, #tpu.memory_space<vmem>>, %arg4: memref<1x32xf32, #tpu.memory_space<vmem>>, %arg5: memref<1x32xf32, #tpu.memory_space<vmem>>, %arg6: memref<3x96x32xbf16, #tpu.memory_space<vmem>>, %arg7: memref<1x32xf32, #tpu.memory_space<vmem>>, %arg8: memref<1x32xf32, #tpu.memory_space<vmem>>, %arg9: memref<1x32xf32, #tpu.memory_space<vmem>>, %arg10: memref<64x32xf32, #tpu.memory_space<vmem>>, %arg11: memref<1x10x10x4xf32, #tpu.memory_space<vmem>>, %arg12: memref<1x10x10x32xf32, #tpu.memory_space<vmem>>) attributes {dimension_semantics = [#tpu.dimension_semantics<parallel>], iteration_bounds = array<i64: 2>, scalar_prefetch = 0 : i64, scratch_operands = 2 : i64, tpu.core_type = #tpu.core_type<tc>, window_params = [{transform_indices = @transform_0, window_bounds = array<i64: 1, 8, 2, 8, 8>}, {pipeline_mode = #tpu.pipeline_mode<synchronous>, transform_indices = @transform_1, window_bounds = array<i64: 3, 12, 32>}, {pipeline_mode = #tpu.pipeline_mode<synchronous>, transform_indices = @transform_2, window_bounds = array<i64: 1, 32>}, {pipeline_mode = #tpu.pipeline_mode<synchronous>, transform_indices = @transform_3, window_bounds = array<i64: 1, 32>}, {pipeline_mode = #tpu.pipeline_mode<synchronous>, transform_indices = @transform_4, window_bounds = array<i64: 1, 32>}, {pipeline_mode = #tpu.pipeline_mode<synchronous>, transform_indices = @transform_5, window_bounds = array<i64: 3, 96, 32>}, {pipeline_mode = #tpu.pipeline_mode<synchronous>, transform_indices = @transform_6, window_bounds = array<i64: 1, 32>}, {pipeline_mode = #tpu.pipeline_mode<synchronous>, transform_indices = @transform_7, window_bounds = array<i64: 1, 32>}, {pipeline_mode = #tpu.pipeline_mode<synchronous>, transform_indices = @transform_8, window_bounds = array<i64: 1, 32>}, {transform_indices = @transform_9, window_bounds = array<i64: 64, 32>}]} {
    %c0 = arith.constant 0 : index
    %c0_0 = arith.constant 0 : index
    %c0_1 = arith.constant 0 : index
    %c0_2 = arith.constant 0 : index
    %c0_3 = arith.constant 0 : index
    %0 = vector.load %arg1[%c0, %c0_0, %c0_1, %c0_2, %c0_3] : memref<1x8x2x8x8xf32, #tpu.memory_space<vmem>>, vector<1x8x2x8x8xf32>
    %1 = vector.extract_strided_slice %0 {offsets = [0, 0, 0, 0, 0], sizes = [1, 8, 1, 8, 8], strides = [1, 1, 1, 1, 1]} : vector<1x8x2x8x8xf32> to vector<1x8x1x8x8xf32>
    %2 = vector.shape_cast %1 : vector<1x8x1x8x8xf32> to vector<1x8x8x8xf32>
    %3 = vector.extract_strided_slice %0 {offsets = [0, 0, 1, 0, 0], sizes = [1, 8, 1, 8, 8], strides = [1, 1, 1, 1, 1]} : vector<1x8x2x8x8xf32> to vector<1x8x1x8x8xf32>
    %4 = vector.shape_cast %3 : vector<1x8x1x8x8xf32> to vector<1x8x8x8xf32>
    %5 = arith.maximumf %2, %4 : vector<1x8x8x8xf32>
    %6 = vector.extract_strided_slice %5 {offsets = [0, 0, 0, 0], sizes = [1, 8, 8, 4], strides = [1, 1, 1, 1]} : vector<1x8x8x8xf32> to vector<1x8x8x4xf32>
    %7 = vector.extract_strided_slice %5 {offsets = [0, 0, 0, 4], sizes = [1, 8, 8, 4], strides = [1, 1, 1, 1]} : vector<1x8x8x8xf32> to vector<1x8x8x4xf32>
    %8 = arith.maximumf %6, %7 : vector<1x8x8x4xf32>
    %cst = arith.constant 0.000000e+00 : f32
    %9 = vector.broadcast %cst : f32 to vector<1x1x10x4xf32>
    %cst_4 = arith.constant 0.000000e+00 : f32
    %10 = vector.broadcast %cst_4 : f32 to vector<1x10x1x4xf32>
    %c0_5 = arith.constant 0 : index
    %c0_6 = arith.constant 0 : index
    %c0_7 = arith.constant 0 : index
    %c0_8 = arith.constant 0 : index
    %11 = vector.load %arg11[%c0_5, %c0_6, %c0_7, %c0_8] : memref<1x10x10x4xf32, #tpu.memory_space<vmem>>, vector<1x1x10x4xf32>
    tpu.vector_store %arg11[%c0_5, %c0_6, %c0_7, %c0_8], %9 {strides = array<i32>} : memref<1x10x10x4xf32, #tpu.memory_space<vmem>>, vector<1x1x10x4xf32>,
    %c0_9 = arith.constant 0 : index
    %c9 = arith.constant 9 : index
    %c0_10 = arith.constant 0 : index
    %c0_11 = arith.constant 0 : index
    %12 = vector.load %arg11[%c0_9, %c9, %c0_10, %c0_11] : memref<1x10x10x4xf32, #tpu.memory_space<vmem>>, vector<1x1x10x4xf32>
    tpu.vector_store %arg11[%c0_9, %c9, %c0_10, %c0_11], %9 {strides = array<i32>} : memref<1x10x10x4xf32, #tpu.memory_space<vmem>>, vector<1x1x10x4xf32>,
    %c0_12 = arith.constant 0 : index
    %c0_13 = arith.constant 0 : index
    %c0_14 = arith.constant 0 : index
    %c0_15 = arith.constant 0 : index
    %13 = vector.load %arg11[%c0_12, %c0_13, %c0_14, %c0_15] : memref<1x10x10x4xf32, #tpu.memory_space<vmem>>, vector<1x10x1x4xf32>
    tpu.vector_store %arg11[%c0_12, %c0_13, %c0_14, %c0_15], %10 {strides = array<i32>} : memref<1x10x10x4xf32, #tpu.memory_space<vmem>>, vector<1x10x1x4xf32>,
    %c0_16 = arith.constant 0 : index
    %c0_17 = arith.constant 0 : index
    %c9_18 = arith.constant 9 : index
    %c0_19 = arith.constant 0 : index
    %14 = vector.load %arg11[%c0_16, %c0_17, %c9_18, %c0_19] : memref<1x10x10x4xf32, #tpu.memory_space<vmem>>, vector<1x10x1x4xf32>
    tpu.vector_store %arg11[%c0_16, %c0_17, %c9_18, %c0_19], %10 {strides = array<i32>} : memref<1x10x10x4xf32, #tpu.memory_space<vmem>>, vector<1x10x1x4xf32>,
    %c0_20 = arith.constant 0 : index
    %c1 = arith.constant 1 : index
    %c1_21 = arith.constant 1 : index
    %c0_22 = arith.constant 0 : index
    %15 = vector.load %arg11[%c0_20, %c1, %c1_21, %c0_22] : memref<1x10x10x4xf32, #tpu.memory_space<vmem>>, vector<1x8x8x4xf32>
    tpu.vector_store %arg11[%c0_20, %c1, %c1_21, %c0_22], %8 {strides = array<i32>} : memref<1x10x10x4xf32, #tpu.memory_space<vmem>>, vector<1x8x8x4xf32>,
    %c0_23 = arith.constant 0 : index
    %c0_24 = arith.constant 0 : index
    %c0_25 = arith.constant 0 : index
    %c0_26 = arith.constant 0 : index
    %16 = vector.load %arg11[%c0_23, %c0_24, %c0_25, %c0_26] : memref<1x10x10x4xf32, #tpu.memory_space<vmem>>, vector<1x10x10x4xf32>
    %17 = vector.extract_strided_slice %16 {offsets = [0, 0, 0, 0], sizes = [1, 10, 8, 4], strides = [1, 1, 1, 1]} : vector<1x10x10x4xf32> to vector<1x10x8x4xf32>
    %18 = arith.truncf %17 : vector<1x10x8x4xf32> to vector<1x10x8x4xbf16>
    %19 = vector.extract_strided_slice %16 {offsets = [0, 0, 1, 0], sizes = [1, 10, 8, 4], strides = [1, 1, 1, 1]} : vector<1x10x10x4xf32> to vector<1x10x8x4xf32>
    %20 = arith.truncf %19 : vector<1x10x8x4xf32> to vector<1x10x8x4xbf16>
    %21 = vector.extract_strided_slice %16 {offsets = [0, 0, 2, 0], sizes = [1, 10, 8, 4], strides = [1, 1, 1, 1]} : vector<1x10x10x4xf32> to vector<1x10x8x4xf32>
    %22 = arith.truncf %21 : vector<1x10x8x4xf32> to vector<1x10x8x4xbf16>
    %23 = tpu.concatenate %18, %20, %22 in 3 : vector<1x10x8x4xbf16>, vector<1x10x8x4xbf16>, vector<1x10x8x4xbf16> -> vector<1x10x8x12xbf16>
    %cst_27 = arith.constant 0.000000e+00 : f32
    %24 = vector.broadcast %cst_27 : f32 to vector<64x32xf32>
    %25 = vector.extract_strided_slice %23 {offsets = [0, 0, 0, 0], sizes = [1, 8, 8, 12], strides = [1, 1, 1, 1]} : vector<1x10x8x12xbf16> to vector<1x8x8x12xbf16>
    %26 = vector.shape_cast %25 : vector<1x8x8x12xbf16> to vector<64x12xbf16>
    %c0_28 = arith.constant 0 : index
    %c0_29 = arith.constant 0 : index
    %c0_30 = arith.constant 0 : index
    %27 = vector.load %arg2[%c0_28, %c0_29, %c0_30] : memref<3x12x32xbf16, #tpu.memory_space<vmem>>, vector<1x12x32xbf16>
    %28 = vector.shape_cast %27 : vector<1x12x32xbf16> to vector<12x32xbf16>
    %cst_31 = arith.constant dense<0.000000e+00> : vector<64x32xf32>
    %29 = tpu.matmul %26, %28, %cst_31 {dimension_numbers = #tpu.dot_dimension_numbers<[1], [0], [0], [1], [0, 0, 1, 1], [], []>} : vector<64x12xbf16>, vector<12x32xbf16>, vector<64x32xf32> -> vector<64x32xf32>
    %30 = arith.addf %24, %29 : vector<64x32xf32>
    %31 = vector.extract_strided_slice %23 {offsets = [0, 1, 0, 0], sizes = [1, 8, 8, 12], strides = [1, 1, 1, 1]} : vector<1x10x8x12xbf16> to vector<1x8x8x12xbf16>
    %32 = vector.shape_cast %31 : vector<1x8x8x12xbf16> to vector<64x12xbf16>
    %c1_32 = arith.constant 1 : index
    %c0_33 = arith.constant 0 : index
    %c0_34 = arith.constant 0 : index
    %33 = vector.load %arg2[%c1_32, %c0_33, %c0_34] : memref<3x12x32xbf16, #tpu.memory_space<vmem>>, vector<1x12x32xbf16>
    %34 = vector.shape_cast %33 : vector<1x12x32xbf16> to vector<12x32xbf16>
    %cst_35 = arith.constant dense<0.000000e+00> : vector<64x32xf32>
    %35 = tpu.matmul %32, %34, %cst_35 {dimension_numbers = #tpu.dot_dimension_numbers<[1], [0], [0], [1], [0, 0, 1, 1], [], []>} : vector<64x12xbf16>, vector<12x32xbf16>, vector<64x32xf32> -> vector<64x32xf32>
    %36 = arith.addf %30, %35 : vector<64x32xf32>
    %37 = vector.extract_strided_slice %23 {offsets = [0, 2, 0, 0], sizes = [1, 8, 8, 12], strides = [1, 1, 1, 1]} : vector<1x10x8x12xbf16> to vector<1x8x8x12xbf16>
    %38 = vector.shape_cast %37 : vector<1x8x8x12xbf16> to vector<64x12xbf16>
    %c2 = arith.constant 2 : index
    %c0_36 = arith.constant 0 : index
    %c0_37 = arith.constant 0 : index
    %39 = vector.load %arg2[%c2, %c0_36, %c0_37] : memref<3x12x32xbf16, #tpu.memory_space<vmem>>, vector<1x12x32xbf16>
    %40 = vector.shape_cast %39 : vector<1x12x32xbf16> to vector<12x32xbf16>
    %cst_38 = arith.constant dense<0.000000e+00> : vector<64x32xf32>
    %41 = tpu.matmul %38, %40, %cst_38 {dimension_numbers = #tpu.dot_dimension_numbers<[1], [0], [0], [1], [0, 0, 1, 1], [], []>} : vector<64x12xbf16>, vector<12x32xbf16>, vector<64x32xf32> -> vector<64x32xf32>
    %42 = arith.addf %36, %41 : vector<64x32xf32>
    %c0_39 = arith.constant 0 : index
    %c0_40 = arith.constant 0 : index
    %43 = vector.load %arg3[%c0_39, %c0_40] : memref<1x32xf32, #tpu.memory_space<vmem>>, vector<1x32xf32>
    %44 = vector.broadcast %43 : vector<1x32xf32> to vector<64x32xf32>
    %45 = arith.addf %42, %44 : vector<64x32xf32>
    %c0_41 = arith.constant 0 : index
    %c0_42 = arith.constant 0 : index
    %46 = vector.load %arg4[%c0_41, %c0_42] : memref<1x32xf32, #tpu.memory_space<vmem>>, vector<1x32xf32>
    %c0_43 = arith.constant 0 : index
    %c0_44 = arith.constant 0 : index
    %47 = vector.load %arg5[%c0_43, %c0_44] : memref<1x32xf32, #tpu.memory_space<vmem>>, vector<1x32xf32>
    %48 = vector.shape_cast %45 : vector<64x32xf32> to vector<1x64x32xf32>
    %cst_45 = arith.constant dense<0.000000e+00> : vector<1x32xf32>
    %49 = vector.multi_reduction <add>, %48, %cst_45 [1] : vector<1x64x32xf32> to vector<1x32xf32>
    %50 = vector.shape_cast %49 : vector<1x32xf32> to vector<1x1x32xf32>
    %cst_46 = arith.constant 6.400000e+01 : f32
    %51 = vector.broadcast %cst_46 : f32 to vector<1x1x32xf32>
    %52 = arith.divf %50, %51 : vector<1x1x32xf32>
    %53 = vector.broadcast %52 : vector<1x1x32xf32> to vector<1x64x32xf32>
    %54 = arith.subf %48, %53 : vector<1x64x32xf32>
    %55 = arith.mulf %54, %54 : vector<1x64x32xf32>
    %cst_47 = arith.constant dense<0.000000e+00> : vector<1x32xf32>
    %56 = vector.multi_reduction <add>, %55, %cst_47 [1] : vector<1x64x32xf32> to vector<1x32xf32>
    %57 = vector.shape_cast %56 : vector<1x32xf32> to vector<1x1x32xf32>
    %cst_48 = arith.constant 6.400000e+01 : f32
    %58 = vector.broadcast %cst_48 : f32 to vector<1x1x32xf32>
    %59 = arith.divf %57, %58 : vector<1x1x32xf32>
    %cst_49 = arith.constant 9.99999974E-6 : f32
    %60 = vector.broadcast %cst_49 : f32 to vector<1x1x32xf32>
    %61 = arith.addf %59, %60 : vector<1x1x32xf32>
    %62 = math.rsqrt %61 : vector<1x1x32xf32>
    %63 = vector.broadcast %62 : vector<1x1x32xf32> to vector<1x64x32xf32>
    %64 = arith.mulf %54, %63 : vector<1x64x32xf32>
    %65 = vector.shape_cast %46 : vector<1x32xf32> to vector<1x1x32xf32>
    %66 = vector.broadcast %65 : vector<1x1x32xf32> to vector<1x64x32xf32>
    %67 = arith.mulf %64, %66 : vector<1x64x32xf32>
    %68 = vector.shape_cast %47 : vector<1x32xf32> to vector<1x1x32xf32>
    %69 = vector.broadcast %68 : vector<1x1x32xf32> to vector<1x64x32xf32>
    %70 = arith.addf %67, %69 : vector<1x64x32xf32>
    %cst_50 = arith.constant 0.000000e+00 : f32
    %71 = vector.broadcast %cst_50 : f32 to vector<1x64x32xf32>
    %72 = arith.maximumf %70, %71 : vector<1x64x32xf32>
    %73 = vector.shape_cast %72 : vector<1x64x32xf32> to vector<64x32xf32>
    %cst_51 = arith.constant 0.000000e+00 : f32
    %74 = vector.broadcast %cst_51 : f32 to vector<1x1x10x32xf32>
    %cst_52 = arith.constant 0.000000e+00 : f32
    %75 = vector.broadcast %cst_52 : f32 to vector<1x10x1x32xf32>
    %c0_53 = arith.constant 0 : index
    %c0_54 = arith.constant 0 : index
    %c0_55 = arith.constant 0 : index
    %c0_56 = arith.constant 0 : index
    %76 = vector.load %arg12[%c0_53, %c0_54, %c0_55, %c0_56] : memref<1x10x10x32xf32, #tpu.memory_space<vmem>>, vector<1x1x10x32xf32>
    tpu.vector_store %arg12[%c0_53, %c0_54, %c0_55, %c0_56], %74 {strides = array<i32>} : memref<1x10x10x32xf32, #tpu.memory_space<vmem>>, vector<1x1x10x32xf32>,
    %c0_57 = arith.constant 0 : index
    %c9_58 = arith.constant 9 : index
    %c0_59 = arith.constant 0 : index
    %c0_60 = arith.constant 0 : index
    %77 = vector.load %arg12[%c0_57, %c9_58, %c0_59, %c0_60] : memref<1x10x10x32xf32, #tpu.memory_space<vmem>>, vector<1x1x10x32xf32>
    tpu.vector_store %arg12[%c0_57, %c9_58, %c0_59, %c0_60], %74 {strides = array<i32>} : memref<1x10x10x32xf32, #tpu.memory_space<vmem>>, vector<1x1x10x32xf32>,
    %c0_61 = arith.constant 0 : index
    %c0_62 = arith.constant 0 : index
    %c0_63 = arith.constant 0 : index
    %c0_64 = arith.constant 0 : index
    %78 = vector.load %arg12[%c0_61, %c0_62, %c0_63, %c0_64] : memref<1x10x10x32xf32, #tpu.memory_space<vmem>>, vector<1x10x1x32xf32>
    tpu.vector_store %arg12[%c0_61, %c0_62, %c0_63, %c0_64], %75 {strides = array<i32>} : memref<1x10x10x32xf32, #tpu.memory_space<vmem>>, vector<1x10x1x32xf32>,
    %c0_65 = arith.constant 0 : index
    %c0_66 = arith.constant 0 : index
    %c9_67 = arith.constant 9 : index
    %c0_68 = arith.constant 0 : index
    %79 = vector.load %arg12[%c0_65, %c0_66, %c9_67, %c0_68] : memref<1x10x10x32xf32, #tpu.memory_space<vmem>>, vector<1x10x1x32xf32>
    tpu.vector_store %arg12[%c0_65, %c0_66, %c9_67, %c0_68], %75 {strides = array<i32>} : memref<1x10x10x32xf32, #tpu.memory_space<vmem>>, vector<1x10x1x32xf32>,
    %80 = vector.shape_cast %73 : vector<64x32xf32> to vector<1x8x8x32xf32>
    %c0_69 = arith.constant 0 : index
    %c1_70 = arith.constant 1 : index
    %c1_71 = arith.constant 1 : index
    %c0_72 = arith.constant 0 : index
    %81 = vector.load %arg12[%c0_69, %c1_70, %c1_71, %c0_72] : memref<1x10x10x32xf32, #tpu.memory_space<vmem>>, vector<1x8x8x32xf32>
    tpu.vector_store %arg12[%c0_69, %c1_70, %c1_71, %c0_72], %80 {strides = array<i32>} : memref<1x10x10x32xf32, #tpu.memory_space<vmem>>, vector<1x8x8x32xf32>,
    %c0_73 = arith.constant 0 : index
    %c0_74 = arith.constant 0 : index
    %c0_75 = arith.constant 0 : index
    %c0_76 = arith.constant 0 : index
    %82 = vector.load %arg12[%c0_73, %c0_74, %c0_75, %c0_76] : memref<1x10x10x32xf32, #tpu.memory_space<vmem>>, vector<1x10x10x32xf32>
    %83 = vector.extract_strided_slice %82 {offsets = [0, 0, 0, 0], sizes = [1, 10, 8, 32], strides = [1, 1, 1, 1]} : vector<1x10x10x32xf32> to vector<1x10x8x32xf32>
    %84 = arith.truncf %83 : vector<1x10x8x32xf32> to vector<1x10x8x32xbf16>
    %85 = vector.extract_strided_slice %82 {offsets = [0, 0, 1, 0], sizes = [1, 10, 8, 32], strides = [1, 1, 1, 1]} : vector<1x10x10x32xf32> to vector<1x10x8x32xf32>
    %86 = arith.truncf %85 : vector<1x10x8x32xf32> to vector<1x10x8x32xbf16>
    %87 = vector.extract_strided_slice %82 {offsets = [0, 0, 2, 0], sizes = [1, 10, 8, 32], strides = [1, 1, 1, 1]} : vector<1x10x10x32xf32> to vector<1x10x8x32xf32>
    %88 = arith.truncf %87 : vector<1x10x8x32xf32> to vector<1x10x8x32xbf16>
    %89 = tpu.concatenate %84, %86, %88 in 3 : vector<1x10x8x32xbf16>, vector<1x10x8x32xbf16>, vector<1x10x8x32xbf16> -> vector<1x10x8x96xbf16>
    %cst_77 = arith.constant 0.000000e+00 : f32
    %90 = vector.broadcast %cst_77 : f32 to vector<64x32xf32>
    %91 = vector.extract_strided_slice %89 {offsets = [0, 0, 0, 0], sizes = [1, 8, 8, 96], strides = [1, 1, 1, 1]} : vector<1x10x8x96xbf16> to vector<1x8x8x96xbf16>
    %92 = vector.shape_cast %91 : vector<1x8x8x96xbf16> to vector<64x96xbf16>
    %c0_78 = arith.constant 0 : index
    %c0_79 = arith.constant 0 : index
    %c0_80 = arith.constant 0 : index
    %93 = vector.load %arg6[%c0_78, %c0_79, %c0_80] : memref<3x96x32xbf16, #tpu.memory_space<vmem>>, vector<1x96x32xbf16>
    %94 = vector.shape_cast %93 : vector<1x96x32xbf16> to vector<96x32xbf16>
    %cst_81 = arith.constant dense<0.000000e+00> : vector<64x32xf32>
    %95 = tpu.matmul %92, %94, %cst_81 {dimension_numbers = #tpu.dot_dimension_numbers<[1], [0], [0], [1], [0, 0, 1, 1], [], []>} : vector<64x96xbf16>, vector<96x32xbf16>, vector<64x32xf32> -> vector<64x32xf32>
    %96 = arith.addf %90, %95 : vector<64x32xf32>
    %97 = vector.extract_strided_slice %89 {offsets = [0, 1, 0, 0], sizes = [1, 8, 8, 96], strides = [1, 1, 1, 1]} : vector<1x10x8x96xbf16> to vector<1x8x8x96xbf16>
    %98 = vector.shape_cast %97 : vector<1x8x8x96xbf16> to vector<64x96xbf16>
    %c1_82 = arith.constant 1 : index
    %c0_83 = arith.constant 0 : index
    %c0_84 = arith.constant 0 : index
    %99 = vector.load %arg6[%c1_82, %c0_83, %c0_84] : memref<3x96x32xbf16, #tpu.memory_space<vmem>>, vector<1x96x32xbf16>
    %100 = vector.shape_cast %99 : vector<1x96x32xbf16> to vector<96x32xbf16>
    %cst_85 = arith.constant dense<0.000000e+00> : vector<64x32xf32>
    %101 = tpu.matmul %98, %100, %cst_85 {dimension_numbers = #tpu.dot_dimension_numbers<[1], [0], [0], [1], [0, 0, 1, 1], [], []>} : vector<64x96xbf16>, vector<96x32xbf16>, vector<64x32xf32> -> vector<64x32xf32>
    %102 = arith.addf %96, %101 : vector<64x32xf32>
    %103 = vector.extract_strided_slice %89 {offsets = [0, 2, 0, 0], sizes = [1, 8, 8, 96], strides = [1, 1, 1, 1]} : vector<1x10x8x96xbf16> to vector<1x8x8x96xbf16>
    %104 = vector.shape_cast %103 : vector<1x8x8x96xbf16> to vector<64x96xbf16>
    %c2_86 = arith.constant 2 : index
    %c0_87 = arith.constant 0 : index
    %c0_88 = arith.constant 0 : index
    %105 = vector.load %arg6[%c2_86, %c0_87, %c0_88] : memref<3x96x32xbf16, #tpu.memory_space<vmem>>, vector<1x96x32xbf16>
    %106 = vector.shape_cast %105 : vector<1x96x32xbf16> to vector<96x32xbf16>
    %cst_89 = arith.constant dense<0.000000e+00> : vector<64x32xf32>
    %107 = tpu.matmul %104, %106, %cst_89 {dimension_numbers = #tpu.dot_dimension_numbers<[1], [0], [0], [1], [0, 0, 1, 1], [], []>} : vector<64x96xbf16>, vector<96x32xbf16>, vector<64x32xf32> -> vector<64x32xf32>
    %108 = arith.addf %102, %107 : vector<64x32xf32>
    %c0_90 = arith.constant 0 : index
    %c0_91 = arith.constant 0 : index
    %109 = vector.load %arg7[%c0_90, %c0_91] : memref<1x32xf32, #tpu.memory_space<vmem>>, vector<1x32xf32>
    %110 = vector.broadcast %109 : vector<1x32xf32> to vector<64x32xf32>
    %111 = arith.addf %108, %110 : vector<64x32xf32>
    %c0_92 = arith.constant 0 : index
    %c0_93 = arith.constant 0 : index
    %112 = vector.load %arg8[%c0_92, %c0_93] : memref<1x32xf32, #tpu.memory_space<vmem>>, vector<1x32xf32>
    %c0_94 = arith.constant 0 : index
    %c0_95 = arith.constant 0 : index
    %113 = vector.load %arg9[%c0_94, %c0_95] : memref<1x32xf32, #tpu.memory_space<vmem>>, vector<1x32xf32>
    %114 = vector.shape_cast %111 : vector<64x32xf32> to vector<1x64x32xf32>
    %cst_96 = arith.constant dense<0.000000e+00> : vector<1x32xf32>
    %115 = vector.multi_reduction <add>, %114, %cst_96 [1] : vector<1x64x32xf32> to vector<1x32xf32>
    %116 = vector.shape_cast %115 : vector<1x32xf32> to vector<1x1x32xf32>
    %cst_97 = arith.constant 6.400000e+01 : f32
    %117 = vector.broadcast %cst_97 : f32 to vector<1x1x32xf32>
    %118 = arith.divf %116, %117 : vector<1x1x32xf32>
    %119 = vector.broadcast %118 : vector<1x1x32xf32> to vector<1x64x32xf32>
    %120 = arith.subf %114, %119 : vector<1x64x32xf32>
    %121 = arith.mulf %120, %120 : vector<1x64x32xf32>
    %cst_98 = arith.constant dense<0.000000e+00> : vector<1x32xf32>
    %122 = vector.multi_reduction <add>, %121, %cst_98 [1] : vector<1x64x32xf32> to vector<1x32xf32>
    %123 = vector.shape_cast %122 : vector<1x32xf32> to vector<1x1x32xf32>
    %cst_99 = arith.constant 6.400000e+01 : f32
    %124 = vector.broadcast %cst_99 : f32 to vector<1x1x32xf32>
    %125 = arith.divf %123, %124 : vector<1x1x32xf32>
    %cst_100 = arith.constant 9.99999974E-6 : f32
    %126 = vector.broadcast %cst_100 : f32 to vector<1x1x32xf32>
    %127 = arith.addf %125, %126 : vector<1x1x32xf32>
    %128 = math.rsqrt %127 : vector<1x1x32xf32>
    %129 = vector.broadcast %128 : vector<1x1x32xf32> to vector<1x64x32xf32>
    %130 = arith.mulf %120, %129 : vector<1x64x32xf32>
    %131 = vector.shape_cast %112 : vector<1x32xf32> to vector<1x1x32xf32>
    %132 = vector.broadcast %131 : vector<1x1x32xf32> to vector<1x64x32xf32>
    %133 = arith.mulf %130, %132 : vector<1x64x32xf32>
    %134 = vector.shape_cast %113 : vector<1x32xf32> to vector<1x1x32xf32>
    %135 = vector.broadcast %134 : vector<1x1x32xf32> to vector<1x64x32xf32>
    %136 = arith.addf %133, %135 : vector<1x64x32xf32>
    %cst_101 = arith.constant 0.000000e+00 : f32
    %137 = vector.broadcast %cst_101 : f32 to vector<1x64x32xf32>
    %138 = arith.maximumf %136, %137 : vector<1x64x32xf32>
    %139 = vector.shape_cast %138 : vector<1x64x32xf32> to vector<64x32xf32>
    %c0_102 = arith.constant 0 : index
    %c0_103 = arith.constant 0 : index
    %140 = vector.load %arg10[%c0_102, %c0_103] : memref<64x32xf32, #tpu.memory_space<vmem>>, vector<64x32xf32>
    tpu.vector_store %arg10[%c0_102, %c0_103], %139 {strides = array<i32>} : memref<64x32xf32, #tpu.memory_space<vmem>>, vector<64x32xf32>,
    return
  }
  func.func @transform_0(%arg0: i32) -> (i32, i32, i32, i32, i32) {
    %c0_i32 = arith.constant 0 : i32
    %c0_i32_0 = arith.constant 0 : i32
    %c0_i32_1 = arith.constant 0 : i32
    %c0_i32_2 = arith.constant 0 : i32
    %c0_i32_3 = arith.constant 0 : i32
    return %arg0, %c0_i32, %c0_i32_0, %c0_i32_1, %c0_i32_2 : i32, i32, i32, i32, i32
  }
  func.func @transform_1(%arg0: i32) -> (i32, i32, i32) {
    %c0_i32 = arith.constant 0 : i32
    %c0_i32_0 = arith.constant 0 : i32
    %c0_i32_1 = arith.constant 0 : i32
    %c0_i32_2 = arith.constant 0 : i32
    return %c0_i32, %c0_i32_0, %c0_i32_1 : i32, i32, i32
  }
  func.func @transform_2(%arg0: i32) -> (i32, i32) {
    %c0_i32 = arith.constant 0 : i32
    %c0_i32_0 = arith.constant 0 : i32
    %c0_i32_1 = arith.constant 0 : i32
    return %c0_i32, %c0_i32_0 : i32, i32
  }
  func.func @transform_3(%arg0: i32) -> (i32, i32) {
    %c0_i32 = arith.constant 0 : i32
    %c0_i32_0 = arith.constant 0 : i32
    %c0_i32_1 = arith.constant 0 : i32
    return %c0_i32, %c0_i32_0 : i32, i32
  }
  func.func @transform_4(%arg0: i32) -> (i32, i32) {
    %c0_i32 = arith.constant 0 : i32
    %c0_i32_0 = arith.constant 0 : i32
    %c0_i32_1 = arith.constant 0 : i32
    return %c0_i32, %c0_i32_0 : i32, i32
  }
  func.func @transform_5(%arg0: i32) -> (i32, i32, i32) {
    %c0_i32 = arith.constant 0 : i32
    %c0_i32_0 = arith.constant 0 : i32
    %c0_i32_1 = arith.constant 0 : i32
    %c0_i32_2 = arith.constant 0 : i32
    return %c0_i32, %c0_i32_0, %c0_i32_1 : i32, i32, i32
  }
  func.func @transform_6(%arg0: i32) -> (i32, i32) {
    %c0_i32 = arith.constant 0 : i32
    %c0_i32_0 = arith.constant 0 : i32
    %c0_i32_1 = arith.constant 0 : i32
    return %c0_i32, %c0_i32_0 : i32, i32
  }
  func.func @transform_7(%arg0: i32) -> (i32, i32) {
    %c0_i32 = arith.constant 0 : i32
    %c0_i32_0 = arith.constant 0 : i32
    %c0_i32_1 = arith.constant 0 : i32
    return %c0_i32, %c0_i32_0 : i32, i32
  }
  func.func @transform_8(%arg0: i32) -> (i32, i32) {
    %c0_i32 = arith.constant 0 : i32
    %c0_i32_0 = arith.constant 0 : i32
    %c0_i32_1 = arith.constant 0 : i32
    return %c0_i32, %c0_i32_0 : i32, i32
  }
  func.func @transform_9(%arg0: i32) -> (i32, i32) {
    %c0_i32 = arith.constant 0 : i32
    %c0_i32_0 = arith.constant 0 : i32
    return %arg0, %c0_i32 : i32, i32
  }
}

</mosaic_0001>

<bundles_post_ra>
// kernel: tpu_custom_call.1
= control target key start
LH: loop header
LB: loop body
LE: loop exit
PB: predicated region body
PF: predicated region fallthrough
CT: control target
= control target key end

     0   :  { %14 = vsyncpa [#allocation5], 0  ;;  %s2771_s0 = inlined_call_operand.hbm [shape: f32[2,8,2,8,8], index: 0, kind: input, shape index: {}]   ;;  %s2772_s1 = inlined_call_operand.vmem [shape: bf16[3,12,32], index: 1, kind: input, shape index: {}]   ;;  %s2773_s2 = inlined_call_operand.vmem [shape: f32[1,32], index: 2, kind: input, shape index: {}]   ;;  %s2774_s3 = inlined_call_operand.vmem [shape: f32[1,32], index: 3, kind: input, shape index: {}]   ;;  %s2775_s4 = inlined_call_operand.vmem [shape: f32[1,32], index: 4, kind: input, shape index: {}]   ;;  %s2776_s5 = inlined_call_operand.vmem [shape: bf16[3,96,32], index: 5, kind: input, shape index: {}]   ;;  %s2777_s6 = inlined_call_operand.vmem [shape: f32[1,32], index: 6, kind: input, shape index: {}]   ;;  %s2778_s7 = inlined_call_operand.vmem [shape: f32[1,32], index: 7, kind: input, shape index: {}]   ;;  %s2779_s8 = inlined_call_operand.vmem [shape: f32[1,32], index: 8, kind: input, shape index: {}]   ;;  %s2780_s9 = inlined_call_operand.vmem [shape: f32[128,32], index: 9, kind: output, shape index: {}]  }
   0x1   :  { %16 = vsyncpa [#allocation5 + $0x1], 0  ;;  %s2186_s30 = smov 0   ;;  %s2188_s10 = smov 0  }
   0x2   :  { %s2190_s11 = smov 0   ;;  %s2192_s12 = smov 0  }
   0x3 LB: > { %s1828_s13 = sadd.s32 4294967295, %s2125_s12   ;;  %s2206_s14 = sadd.s32 1, %s2125_s12   ;;  %s2125_s12 = sphi %s2192_s12, %s2787_s12   ;;  %s2121_s11 = sphi %s2190_s11, %s2786_s11   ;;  %s2117_s10 = sphi %s2188_s10, %s2785_s10   ;;  %s2113_s30 = sphi %s2186_s30, %s2784_s30  }
   0x4   : > { %s26_s15 = ssub.s32 %s2125_s12, %s2206_s14  ;;  %s29_s16 = sadd.s32 1, %s2121_s11 }
   0x5   : > { %p27_p0 = scmp.eq.s32.totalorder %s26_s15, 0  ;;  %p36_p1 = scmp.ne.s32.totalorder %s2121_s11, %s2117_s10 }
   0x6   : > { %p37_p2 = scmp.eq.s32.totalorder %s2125_s12, 0  ;;  %p42_p3 = scmp.ne.s32.totalorder %s2117_s10, %s2113_s30 }
   0x7   : > { %s2216_s17 = scalar_select %p27_p0, %s2121_s11, %s29_s16  }
   0x8   : > { %p2218_p4 = por %p37_p2, %p36_p1  ;;  %p43_p5 = scmp.eq.s32.totalorder %s1828_s13, 0 }
   0x9   : > { %p2007_p6 = scmp.lt.s32.totalorder %s2125_s12, 2  ;;  %s284_s20 = sand.u32 1, %s2121_s11  }
   0xa   : > { %p2225_p7 = por %p43_p5, %p42_p3  ;;  %s1832_s21 = sshll.u32 %s284_s20, 7 }
   0xb   : > { %s1977_s22 = sshll.u32 %s2125_s12, 7  ;;  %s288_s26 = scalar_lea.vmem [#allocation4], %s1832_s21 }
   0xc   : > { %s293_s25 = scalar_lea.hbm %s2771_s0, %s1977_s22  ;;  %s296_s27 = sshll.u32 %s288_s26, 4  ;;  %s297_s27 = int_to_ptr.vmem [resolvable:$true] %s296_s27 }
   0xd   : > { %s294_s28 = sshll.u32 %s293_s25, 4  ;;  %p2236_p8 = pnand %p2007_p6, %p2218_p4  ;;  %s295_s28 = int_to_ptr.hbm [resolvable:$true] %s294_s28 }
   0xe   : > { %p1835_p9 = scmp.ge.s32.totalorder %s2125_s12, 1  ;;  %s285_s30 = scalar_lea.sflag [#allocation5], %s284_s20 }
   0xf   : > { %s2061_s15 = sshra.s32 %s295_s28, 4  ;;  %p2065_p11 = pneg %p2236_p8  ;;  %s2062_s15 = int_to_ptr.hbm [resolvable:$true] %s2061_s15 }
  0x10   : > { %s2063_s16 = scalar_lea.hbm %s2062_s15, 128  ;;  %s2068_s23 = scalar_lea.hbm %s2771_s0, 256 }
  0x11   : > { %p2064_p10 = scmp.ne.s32.totalorder %s2062_s15, %s2063_s16  ;;  %p2069_p0 = scmp.lt.s32.totalorder %s2062_s15, %s2771_s0 }
  0x12   : > { %p2070_p1 = scmp.lt.s32.totalorder %s2068_s23, %s2063_s16 }
  0x13   : > { %p2066_p12 = pnand %p2065_p11, %p2064_p10 }
  0x14   : > { %p2071_p2 = por %p2070_p1, %p2069_p0 }
  0x15   : > { %p2067_p13 = pneg %p2066_p12 }
  0x17   : > { %p2072_p3 = pnand %p2071_p2, %p2067_p13 }
  0x19   : > { %2075 = shalt.err (!%p2072_p3)
}
  0x1a   : > { %s2127_s20 = smov 128   ;;  %s2128_s25 = smov 8  }
  0x1b   : > { %2006 = dma.hbm_to_vmem [thread:$0]  (!%p2236_p8), %s295_s28, 2048, %s297_s27, %s285_s30, %s2127_s20, %s2127_s20, %s2128_s25  }
  0x1c   : > { %p304_p4 = scmp.lt.s32.totalorder %s2125_s12, 3 }
  0x1e   : > { %p305_p5 = pnand %p1835_p9, %p304_p4 }
  0x1f   : > { %s310_s26 = sand.u32 (!%p305_p5), 1, %s2117_s10  }
  0x20   : > { %308 = sbr.rel (%p305_p5) target bundleno = 1036 (0x40c), region = 56  ;;  %s1836_s21 = sshll.u32 (!%p305_p5), %s310_s26, 7 }
  0x21   : > { %s311_s15 = scalar_lea.sflag (!%p305_p5), [#allocation5], %s310_s26  ;;  %s314_s16 = scalar_lea.vmem (!%p305_p5), [#allocation4], %s1836_s21 }
  0x25   : > { %2108 = dma.done.wait (%p2225_p7), %s311_s15, 2048  }
  0x26   : > { %2110 = vsyncadd (%p2225_p7), %s311_s15, 4294965248  ;;  %v369_v0 = vld [vmem:[%s314_s16 + $0x60] sm:$0xff]  ;;  %v370_v1 = vld [vmem:[%s314_s16 + $0x68] sm:$0xff]  ;;  %s2129_s27 = smov 124   ;;  %vm428_vm0 = vcmask 24576   ;;  %v2130_v24 = vmov 0.0  }
  0x27   : > { %v365_v2 = vld [vmem:[%s314_s16 + $0x40] sm:$0xff]  ;;  %v2259_v3 = vmax.f32 %v369_v0, %v370_v1  ;;  %v366_v4 = vld [vmem:[%s314_s16 + $0x48] sm:$0xff]  ;;  %v359_v6 = vld [vmem:[%s314_s16 + $0x10] sm:$0xff]  ;;  %434 = vst.msk [vmem:[#allocation2 + $0x50] sm:$0x1] %vm428_vm0, %v2130_v24  ;;  %vm421_vm1 = vcmask 31744  }
  0x28   : > { %v2261_v5 = vmax.f32 %v365_v2, %v366_v4  ;;  %v360_v7 = vld [vmem:[%s314_s16 + $0x18] sm:$0xff]  ;;  %v371_v8 = vld [vmem:[%s314_s16 + $0x70] sm:$0xff]  ;;  %v361_v14 = vld [vmem:[%s314_s16 + $0x20] sm:$0xff]  ;;  %444 = vst.msk [vmem:[#allocation2 + $0x59] sm:$0x1] %vm428_vm0, %v2130_v24  ;;  %vm423_vm2 = vcmask 25600  }
  0x29   : > { %401 = vrot.lane.b32.xlu1 %v2259_v3, %s2129_s27  ;;  %v372_v9 = vld [vmem:[%s314_s16 + $0x78] sm:$0xff]  ;;  %v367_v10 = vld [vmem:[%s314_s16 + $0x50] sm:$0xff]  ;;  %v374_v11 = vmax.f32 %v359_v6, %v360_v7  ;;  %v362_v15 = vld [vmem:[%s314_s16 + $0x28] sm:$0xff]  ;;  %422 = vst.msk [vmem:[#allocation2] sm:$0xff] %vm421_vm1, %v2130_v24  ;;  %s2131_s19 = smov 8   ;;  %s2132_s28 = smov 4  }
  0x2a   : > { %397 = vrot.lane.b32.xlu0 %v2261_v5, %s2129_s27  ;;  %v368_v12 = vld [vmem:[%s314_s16 + $0x58] sm:$0xff]  ;;  %v380_v13 = vmax.f32 %v371_v8, %v372_v9  ;;  %v375_v17 = vmax.f32 %v361_v14, %v362_v15  ;;  %v357_v18 = vld [vmem:[%s314_s16] sm:$0xff]  ;;  %v358_v19 = vld [vmem:[%s314_s16 + $0x8] sm:$0xff]  ;;  %426 = vst.msk [vmem:[#allocation2 + $0x90] sm:$0xff] %vm421_vm1, %v2130_v24  ;;  %vm762_vm3 = vcmask 1045504   ;;  %vm698_vm4 = vcmask 64512  }
  0x2b   : > { %391 = vrot.lane.b32.xlu2 %v374_v11, %s2129_s27  ;;  %v378_v16 = vmax.f32 %v367_v10, %v368_v12  ;;  %v363_v20 = vld [vmem:[%s314_s16 + $0x30] sm:$0xff]  ;;  %v364_v21 = vld [vmem:[%s314_s16 + $0x38] sm:$0xff]  ;;  %v2265_v22 = vmax.f32 %v357_v18, %v358_v19  ;;  %430 = vst.msk [vmem:[#allocation2 + $0x10] sm:$0x1] %vm428_vm0, %v2130_v24  ;;  %vm749_vm5 = vcmask 97280   ;;  %vm918_vm6 = vcmask 261120  }
  0x2c   : > { %v2267_v23 = vmax.f32 %v363_v20, %v364_v21  ;;  %431 = vst.msk [vmem:[#allocation2 + $0x20] sm:$0x1] %vm428_vm0, %v2130_v24  ;;  %vm1041_vm8 = vcmask 253952   ;;  %vm1036_vm12 = vcmask 254976   ;;  %s2134_s23 = smov 64   ;;  %s2135_s18 = smov 32  }
  0x2d   : > { %432 = vst.msk [vmem:[#allocation2 + $0x30] sm:$0x1] %vm428_vm0, %v2130_v24  ;;  %vm1311_vm13 = vcmask 523264   ;;  %vm1413_vm14 = vcmask 785408  }
  0x2e   : > { %433 = vst.msk [vmem:[#allocation2 + $0x40] sm:$0x1] %vm428_vm0, %v2130_v24 }
  0x2f   : > { %435 = vst.msk [vmem:[#allocation2 + $0x60] sm:$0x1] %vm428_vm0, %v2130_v24 }
  0x30   : > { %436 = vst.msk [vmem:[#allocation2 + $0x70] sm:$0x1] %vm428_vm0, %v2130_v24 }
  0x31   : > { %403 = vrot.lane.b32.xlu1 %v380_v13, %s2129_s27  ;;  %437 = vst.msk [vmem:[#allocation2 + $0x80] sm:$0x1] %vm428_vm0, %v2130_v24 }
  0x32   : > { %399 = vrot.lane.b32.xlu0 %v378_v16, %s2129_s27  ;;  %440 = vst.msk [vmem:[#allocation2 + $0x19] sm:$0x1] %vm428_vm0, %v2130_v24 }
  0x33   : > { %393 = vrot.lane.b32.xlu2 %v375_v17, %s2129_s27  ;;  %441 = vst.msk [vmem:[#allocation2 + $0x29] sm:$0x1] %vm428_vm0, %v2130_v24 }
  0x34   : > { %442 = vst.msk [vmem:[#allocation2 + $0x39] sm:$0x1] %vm428_vm0, %v2130_v24 }
  0x35   : > { %443 = vst.msk [vmem:[#allocation2 + $0x49] sm:$0x1] %vm428_vm0, %v2130_v24 }
  0x36   : > { %445 = vst.msk [vmem:[#allocation2 + $0x69] sm:$0x1] %vm428_vm0, %v2130_v24 }
  0x37   : > { %446 = vst.msk [vmem:[#allocation2 + $0x79] sm:$0x1] %vm428_vm0, %v2130_v24 }
  0x38   : > { %447 = vst.msk [vmem:[#allocation2 + $0x89] sm:$0x1] %vm428_vm0, %v2130_v24 }
  0x39   : > { %389 = vrot.lane.b32.xlu1 %v2265_v22, %s2129_s27  ;;  %429 = vst.msk [vmem:[#allocation2] sm:$0x1] %vm428_vm0, %v2130_v24 }
  0x3a   : > { %395 = vrot.lane.b32.xlu0 %v2267_v23, %s2129_s27  ;;  %438 = vst.msk [vmem:[#allocation2 + $0x90] sm:$0x1] %vm428_vm0, %v2130_v24 }
  0x3b   : > { %424 = vst.msk [vmem:[#allocation2 + $0x8] sm:$0x3] %vm423_vm2, %v2130_v24 }
  0x3c   : > { %439 = vst.msk [vmem:[#allocation2 + $0x9] sm:$0x1] %vm428_vm0, %v2130_v24 }
  0x3d   : > { %427 = vst.msk [vmem:[#allocation2 + $0x98] sm:$0x3] %vm423_vm2, %v2130_v24 }
  0x3e   : > { %448 = vst.msk [vmem:[#allocation2 + $0x99] sm:$0x1] %vm428_vm0, %v2130_v24 }
  0x3f   : > { %1035 = vst.msk [vmem:[#allocation3] sm:$0xff] %vm918_vm6, %v2130_v24 }
  0x40   : > { %1039 = vst.msk [vmem:[#allocation3 + $0x90] sm:$0xff] %vm918_vm6, %v2130_v24 }
  0x41   : > { %1044 = vst.msk [vmem:[#allocation3 + $0x20] sm:$0x1] %vm1041_vm8, %v2130_v24 }
  0x42   : > { %1054 = vst.msk [vmem:[#allocation3 + $0x29] sm:$0x1] %vm1041_vm8, %v2130_v24 }
  0x43   : > { %1042 = vst.msk [vmem:[#allocation3] sm:$0x1] %vm1041_vm8, %v2130_v24 }
  0x44   : > { %1043 = vst.msk [vmem:[#allocation3 + $0x10] sm:$0x1] %vm1041_vm8, %v2130_v24 }
  0x45   : > { %1045 = vst.msk [vmem:[#allocation3 + $0x30] sm:$0x1] %vm1041_vm8, %v2130_v24 }
  0x46   : > { %1046 = vst.msk [vmem:[#allocation3 + $0x40] sm:$0x1] %vm1041_vm8, %v2130_v24 }
  0x47   : > { %1047 = vst.msk [vmem:[#allocation3 + $0x50] sm:$0x1] %vm1041_vm8, %v2130_v24 }
  0x48   : > { %1048 = vst.msk [vmem:[#allocation3 + $0x60] sm:$0x1] %vm1041_vm8, %v2130_v24 }
  0x49   : > { %1049 = vst.msk [vmem:[#allocation3 + $0x70] sm:$0x1] %vm1041_vm8, %v2130_v24 }
  0x4a   : > { %1050 = vst.msk [vmem:[#allocation3 + $0x80] sm:$0x1] %vm1041_vm8, %v2130_v24 }
  0x4b   : > { %1051 = vst.msk [vmem:[#allocation3 + $0x90] sm:$0x1] %vm1041_vm8, %v2130_v24 }
  0x4c   : > { %1053 = vst.msk [vmem:[#allocation3 + $0x19] sm:$0x1] %vm1041_vm8, %v2130_v24 }
  0x4d   : > { %1055 = vst.msk [vmem:[#allocation3 + $0x39] sm:$0x1] %vm1041_vm8, %v2130_v24 }
  0x4e   : > { %1056 = vst.msk [vmem:[#allocation3 + $0x49] sm:$0x1] %vm1041_vm8, %v2130_v24 }
  0x4f   : > { %1057 = vst.msk [vmem:[#allocation3 + $0x59] sm:$0x1] %vm1041_vm8, %v2130_v24 }
  0x50   : > { %1058 = vst.msk [vmem:[#allocation3 + $0x69] sm:$0x1] %vm1041_vm8, %v2130_v24 }
  0x51   : > { %1059 = vst.msk [vmem:[#allocation3 + $0x79] sm:$0x1] %vm1041_vm8, %v2130_v24 }
  0x52   : > { %1060 = vst.msk [vmem:[#allocation3 + $0x89] sm:$0x1] %vm1041_vm8, %v2130_v24 }
  0x53   : > { %1037 = vst.msk [vmem:[#allocation3 + $0x8] sm:$0x3] %vm1036_vm12, %v2130_v24 }
  0x54   : > { %1052 = vst.msk [vmem:[#allocation3 + $0x9] sm:$0x1] %vm1041_vm8, %v2130_v24 }
  0x55   : > { %1040 = vst.msk [vmem:[#allocation3 + $0x98] sm:$0x3] %vm1036_vm12, %v2130_v24 }
  0x56   : > { %1061 = vst.msk [vmem:[#allocation3 + $0x99] sm:$0x1] %vm1041_vm8, %v2130_v24 }
  0x85   : > { %v392_v25 = vpop.permute.xlu2 %391 }
  0x86   : > { %v414_v26 = vmax.f32 %v374_v11, %v392_v25 }
  0x88   : > { %451 = vst.msk [vmem:[#allocation2 + $0x21] sm:$0xff] %vm421_vm1, %v414_v26 }
  0x8d   : > { %v394_v27 = vpop.permute.xlu2 %393 }
  0x8e   : > { %v415_v28 = vmax.f32 %v375_v17, %v394_v27 }
  0x8f   : > { %v462_v41 = vld [vmem:[#allocation2 + $0x20] sm:$0xff]  ;;  %v463_v42 = vld [vmem:[#allocation2 + $0x28] sm:$0x3] }
  0x90   : > { %452 = vst.msk [vmem:[#allocation2 + $0x31] sm:$0xff] %vm421_vm1, %v415_v28  ;;  %v2328_v47 = vpack.c.bf16 %v462_v41, %v462_v41  ;;  %v490_v48 = vpack.c.bf16 %v463_v42, %v463_v42 }
  0x92   : > { %v522_v0 = vunpack.c.l.b16 %v2328_v47  ;;  %v523_v1 = vunpack.c.l.b16 %v490_v48 }
  0x97   : > { %v464_v9 = vld [vmem:[#allocation2 + $0x30] sm:$0xff]  ;;  %v465_v10 = vld [vmem:[#allocation2 + $0x38] sm:$0x3] }
  0x98   : > { %v2350_v18 = vpack.c.bf16 %v464_v9, %v464_v9  ;;  %v491_v19 = vpack.c.bf16 %v465_v10, %v465_v10 }
  0x9b   : > { %v402_v29 = vpop.permute.xlu1 %401 }
  0x9c   : > { %v419_v30 = vmax.f32 %v2259_v3, %v402_v29  ;;  %v398_v31 = vpop.permute.xlu0 %397  ;;  %v524_v29 = vunpack.c.l.b16 %v2350_v18 }
  0x9d   : > { %v417_v32 = vmax.f32 %v2261_v5, %v398_v31  ;;  %v458_v31 = vld [vmem:[#allocation2] sm:$0xff] }
  0x9e   : > { %456 = vst.msk [vmem:[#allocation2 + $0x71] sm:$0xff] %vm421_vm1, %v419_v30  ;;  %v525_v30 = vunpack.c.l.b16 %v491_v19  ;;  %v2358_v42 = vpack.c.bf16 %v458_v31, %v458_v31 }
  0x9f   : > { %454 = vst.msk [vmem:[#allocation2 + $0x51] sm:$0xff] %vm421_vm1, %v417_v32  ;;  %v459_v32 = vld [vmem:[#allocation2 + $0x8] sm:$0x3] }
  0xa3   : > { %v404_v33 = vpop.permute.xlu1 %403 }
  0xa4   : > { %v420_v34 = vmax.f32 %v380_v13, %v404_v33  ;;  %v400_v35 = vpop.permute.xlu0 %399 }
  0xa5   : > { %v418_v36 = vmax.f32 %v378_v16, %v400_v35  ;;  %v472_v45 = vld [vmem:[#allocation2 + $0x70] sm:$0xff]  ;;  %v473_v46 = vld [vmem:[#allocation2 + $0x78] sm:$0x3]  ;;  %v2347_v16 = vpack.c.b16 %v523_v1, %v522_v0 }
  0xa6   : > { %457 = vst.msk [vmem:[#allocation2 + $0x81] sm:$0xff] %vm421_vm1, %v420_v34  ;;  %v468_v37 = vld [vmem:[#allocation2 + $0x50] sm:$0xff]  ;;  %v469_v38 = vld [vmem:[#allocation2 + $0x58] sm:$0x3]  ;;  %v2330_v52 = vpack.c.bf16 %v472_v45, %v472_v45  ;;  %v495_v59 = vpack.c.bf16 %v473_v46, %v473_v46 }
  0xa7   : > { %455 = vst.msk [vmem:[#allocation2 + $0x61] sm:$0xff] %vm421_vm1, %v418_v36  ;;  %v2325_v39 = vpack.c.bf16 %v468_v37, %v468_v37  ;;  %v493_v40 = vpack.c.bf16 %v469_v38, %v469_v38  ;;  %v565_v26 = vshll.u32 %v2347_v16, 16 }
  0xa8   : > { %v532_v8 = vunpack.c.l.b16 %v2330_v52  ;;  %v533_v14 = vunpack.c.l.b16 %v495_v59 }
  0xa9   : > { %v528_v43 = vunpack.c.l.b16 %v2325_v39  ;;  %v529_v44 = vunpack.c.l.b16 %v493_v40  ;;  %v563_v40 = vshrl.u32 %v2347_v16, 16  ;;  %v567_v41 = vrot.slane %v565_v26, 1 }
  0xab   : > { %v543_v49 = vpack.c.b16 %v529_v44, %v528_v43  ;;  %v390_v50 = vpop.permute.xlu1 %389  ;;  %v488_v43 = vpack.c.bf16 %v459_v32, %v459_v32  ;;  %v541_v44 = vpack.c.b16 %v525_v30, %v524_v29 }
  0xac   : > { %v396_v51 = vpop.permute.xlu0 %395  ;;  %v413_v53 = vmax.f32 %v2265_v22, %v390_v50  ;;  %v568_v50 = vor.u32 %v567_v41, %v563_v40 }
  0xad   : > { %v643_v54 = vrot.slane %v543_v49, 1  ;;  %v586_v55 = vshll.u32 %v543_v49, 16  ;;  %v474_v56 = vld [vmem:[#allocation2 + $0x80] sm:$0xff]  ;;  %v475_v57 = vld [vmem:[#allocation2 + $0x88] sm:$0x3]  ;;  %v416_v58 = vmax.f32 %v2267_v23, %v396_v51  ;;  %v584_v2 = vshrl.u32 %v543_v49, 16 }
  0xae   : > { %v470_v60 = vld [vmem:[#allocation2 + $0x60] sm:$0xff]  ;;  %v471_v61 = vld [vmem:[#allocation2 + $0x68] sm:$0x3]  ;;  %v2334_v62 = vpack.c.bf16 %v474_v56, %v474_v56  ;;  %v496_v63 = vpack.c.bf16 %v475_v57, %v475_v57  ;;  %450 = vst.msk [vmem:[#allocation2 + $0x11] sm:$0xff] %vm421_vm1, %v413_v53  ;;  %v545_v23 = vpack.c.b16 %v533_v14, %v532_v8  ;;  %v518_v51 = vunpack.c.l.b16 %v2358_v42  ;;  %v476_v14 = vld [vmem:[#allocation2 + $0x90] sm:$0xff] }
  0xaf   : > { %658 = vrot.lane.b32.xlu1 %v643_v54, %s2131_s19  ;;  %v588_v3 = vrot.slane %v586_v55, 1  ;;  %v2339_v4 = vpack.c.bf16 %v470_v60, %v470_v60  ;;  %v494_v5 = vpack.c.bf16 %v471_v61, %v471_v61  ;;  %453 = vst.msk [vmem:[#allocation2 + $0x41] sm:$0xff] %vm421_vm1, %v416_v58  ;;  %v519_v53 = vunpack.c.l.b16 %v488_v43  ;;  %v1843_v43 = vld [vmem:[%s2772_s1 + $0x8] sm:$0xf] }
  0xb0   : > { %v534_v6 = vunpack.c.l.b16 %v2334_v62  ;;  %v535_v7 = vunpack.c.l.b16 %v496_v63  ;;  %v600_v38 = vshll.u32 %v545_v23, 16  ;;  %v598_v48 = vshrl.u32 %v545_v23, 16 }
  0xb1   : > { %v589_v11 = vor.u32 %v588_v3, %v584_v2  ;;  %v530_v12 = vunpack.c.l.b16 %v2339_v4  ;;  %v531_v13 = vunpack.c.l.b16 %v494_v5  ;;  %v572_v54 = vshll.u32 %v541_v44, 16 }
  0xb2   : > { %v2345_v15 = vpack.c.b16 %v535_v7, %v534_v6  ;;  %v602_v49 = vrot.slane %v600_v38, 1  ;;  %v645_v60 = vrot.slane %v545_v23, 1  ;;  %v570_v61 = vshrl.u32 %v541_v44, 16 }
  0xb3   : > { %628 = vrot.lane.b32.xlu2 %v589_v11, %s2132_s28  ;;  %v544_v17 = vpack.c.b16 %v531_v13, %v530_v12  ;;  %v538_v63 = vpack.c.b16 %v519_v53, %v518_v51  ;;  %v574_v0 = vrot.slane %v572_v54, 1  ;;  %v641_v5 = vrot.slane %v541_v44, 1  ;;  %v1979_v44 = vld [vmem:[%s2772_s1 + $0x8] sm:$0x30] }
  0xb4   : > { %v605_v20 = vshrl.u32 %v2345_v15, 16  ;;  %v607_v21 = vshll.u32 %v2345_v15, 16  ;;  %v603_v59 = vor.u32 %v602_v49, %v598_v48  ;;  %v646_v11 = vrot.slane %v2345_v15, 1  ;;  %v1861_v49 = vld [vmem:[%s2772_s1 + $0x10] sm:$0xf] }
  0xb5   : > { %v593_v22 = vshll.u32 %v544_v17, 16  ;;  %v591_v27 = vshrl.u32 %v544_v17, 16  ;;  %v644_v37 = vrot.slane %v544_v17, 1  ;;  %v460_v57 = vld [vmem:[#allocation2 + $0x10] sm:$0xff]  ;;  %v461_v58 = vld [vmem:[#allocation2 + $0x18] sm:$0x3]  ;;  %v575_v7 = vor.u32 %v574_v0, %v570_v61 }
  0xb6   : > { %v609_v25 = vrot.slane %v607_v21, 1  ;;  %v466_v34 = vld [vmem:[#allocation2 + $0x40] sm:$0xff]  ;;  %v467_v35 = vld [vmem:[#allocation2 + $0x48] sm:$0x3]  ;;  %v2369_v2 = vpack.c.bf16 %v460_v57, %v460_v57  ;;  %v489_v3 = vpack.c.bf16 %v461_v58, %v461_v58  ;;  %v551_v6 = vshll.u32 %v538_v63, 16 }
  0xb7   : > { %v595_v28 = vrot.slane %v593_v22, 1  ;;  %v2362_v45 = vpack.c.bf16 %v466_v34, %v466_v34  ;;  %v492_v46 = vpack.c.bf16 %v467_v35, %v467_v35  ;;  %v549_v12 = vshrl.u32 %v538_v63, 16  ;;  %v477_v17 = vld [vmem:[#allocation2 + $0x98] sm:$0x3]  ;;  %v1978_v61 = vld [vmem:[%s2772_s1] sm:$0x30] }
  0xb8   : > { %v610_v33 = vor.u32 %v609_v25, %v605_v20  ;;  %v520_v9 = vunpack.c.l.b16 %v2369_v2  ;;  %v521_v10 = vunpack.c.l.b16 %v489_v3  ;;  %v553_v13 = vrot.slane %v551_v6, 1 }
  0xb9   : > { %v596_v36 = vor.u32 %v595_v28, %v591_v27  ;;  %v526_v55 = vunpack.c.l.b16 %v2362_v45  ;;  %v527_v56 = vunpack.c.l.b16 %v492_v46  ;;  %v2376_v22 = vpack.c.bf16 %v476_v14, %v476_v14 }
  0xba   : > { %634 = vrot.lane.b32.xlu1 %v610_v33, %s2132_s28  ;;  %v539_v21 = vpack.c.b16 %v521_v10, %v520_v9  ;;  %v497_v23 = vpack.c.bf16 %v477_v17, %v477_v17  ;;  %v554_v25 = vor.u32 %v553_v13, %v549_v12  ;;  %v640_v15 = vrot.slane %v2347_v16, 1 }
  0xbb   : > { %630 = vrot.lane.b32.xlu0 %v596_v36, %s2132_s28  ;;  %660 = vrot.lane.b32.xlu2 %v644_v37, %s2131_s19  ;;  %v542_v1 = vpack.c.b16 %v527_v56, %v526_v55  ;;  %v536_v28 = vunpack.c.l.b16 %v2376_v22  ;;  %v638_v38 = vrot.slane %v538_v63, 1  ;;  %v1844_v46 = vor.u32 %v1979_v44, %v1843_v43 }
  0xbc   : > { %v558_v27 = vshll.u32 %v539_v21, 16  ;;  %v537_v29 = vunpack.c.l.b16 %v497_v23  ;;  %v556_v30 = vshrl.u32 %v539_v21, 16  ;;  %v639_v33 = vrot.slane %v539_v21, 1 }
  0xbd   : > { %v579_v8 = vshll.u32 %v542_v1, 16  ;;  %v577_v19 = vshrl.u32 %v542_v1, 16  ;;  %v642_v34 = vrot.slane %v542_v1, 1  ;;  %v764_v48 = vsel %vm762_vm3, %v1844_v46, 0 }
  0xbe   : > { %v560_v31 = vrot.slane %v558_v27, 1  ;;  %v547_v32 = vpack.c.b16 %v537_v29, %v536_v28  ;;  %1999 = vmatpush.bf16.msra.mxu2 %v764_v48  ;;  %773 = vmatpush.bf16.msra.mxu0 %v764_v48 }
  0xbf   : > { %v581_v20 = vrot.slane %v579_v8, 1 }
  0xc0   : > { %v561_v35 = vor.u32 %v560_v31, %v556_v30  ;;  %v614_v36 = vshll.u32 %v547_v32, 16  ;;  %v612_v16 = vshrl.u32 %v547_v32, 16  ;;  %v647_v41 = vrot.slane %v547_v32, 1 }
  0xc1   : > { %v582_v26 = vor.u32 %v581_v20, %v577_v19 }
  0xc2   : > { %622 = vrot.lane.b32.xlu1 %v568_v50, %s2132_s28  ;;  %v616_v37 = vrot.slane %v614_v36, 1  ;;  %v1980_v50 = vld [vmem:[%s2772_s1 + $0x10] sm:$0x30] }
  0xc3   : > { %632 = vrot.lane.b32.xlu0 %v603_v59, %s2132_s28  ;;  %662 = vrot.lane.b32.xlu2 %v645_v60, %s2131_s19  ;;  %v1862_v51 = vor.u32 %v1980_v50, %v1861_v49  ;;  %v1851_v60 = vld [vmem:[%s2772_s1] sm:$0xf] }
  0xc4   : > { %v617_v40 = vor.u32 %v616_v37, %v612_v16  ;;  %v1852_v1 = vor.u32 %v1978_v61, %v1851_v60 }
  0xc5   : > { %v865_v54 = vsel %vm762_vm3, %v1862_v51, 0 }
  0xc6   : > { %874 = vmatpush.bf16.msrb.mxu2 %v865_v54 }
  0xca   : > { %654 = vrot.lane.b32.xlu1 %v641_v5, %s2131_s19 }
  0xcb   : > { %664 = vrot.lane.b32.xlu0 %v646_v11, %s2131_s19  ;;  %624 = vrot.lane.b32.xlu2 %v575_v7, %s2132_s28 }
  0xd2   : > { %618 = vrot.lane.b32.xlu1 %v554_v25, %s2132_s28 }
  0xd3   : > { %652 = vrot.lane.b32.xlu0 %v640_v15, %s2131_s19  ;;  %626 = vrot.lane.b32.xlu2 %v582_v26, %s2132_s28 }
  0xda   : > { %650 = vrot.lane.b32.xlu1 %v639_v33, %s2131_s19 }
  0xdb   : > { %656 = vrot.lane.b32.xlu0 %v642_v34, %s2131_s19  ;;  %620 = vrot.lane.b32.xlu2 %v561_v35, %s2132_s28 }
  0xe3   : > { %648 = vrot.lane.b32.xlu0 %v638_v38, %s2131_s19  ;;  %636 = vrot.lane.b32.xlu2 %v617_v40, %s2132_s28 }
  0xeb   : > { %666 = vrot.lane.b32.xlu0 %v647_v41, %s2131_s19  ;;  %s1837_s19 = sshll.u32 %s1828_s13, 3 }
  0xec   : > { %p351_p6 = scmp.lt.s32.totalorder %s1837_s19, 15 }
  0xee   : > { %s2789_s19 = smov (!%p351_p6, %s1837_s19), 15 }
  0xef   : > { %s1838_s30 = sshll.u32 %s2789_s19, 3 }
 0x10d   : > { %v629_v53 = vpop.permute.xlu2 %628 }
 0x10e   : > { %v685_v58 = vsel %vm421_vm1, %v2325_v39, %v629_v53  ;;  %v819_v39 = vsel %vm762_vm3, %v1852_v1, 0 }
 0x10f   : > { %2000 = vmatpush.bf16.msra.mxu3 %v819_v39  ;;  %828 = vmatpush.bf16.msra.mxu1 %v819_v39 }
 0x115   : > { %v661_v55 = vpop.permute.xlu2 %660 }
 0x11d   : > { %v663_v57 = vpop.permute.xlu2 %662 }
 0x121   : > { %v659_v56 = vpop.permute.xlu1 %658 }
 0x122   : > { %v710_v63 = vsel %vm698_vm4, %v685_v58, %v659_v56 }
 0x123   : > { %v736_v6 = vunpack.c.l.b16 %v710_v63 }
 0x125   : > { %v625_v10 = vpop.permute.xlu2 %624 }
 0x12c   : > { %v635_v59 = vpop.permute.xlu1 %634 }
 0x12d   : > { %v631_v0 = vpop.permute.xlu0 %630  ;;  %v694_v14 = vsel %vm421_vm1, %v2334_v62, %v635_v59  ;;  %v627_v20 = vpop.permute.xlu2 %626  ;;  %v679_v62 = vsel %vm421_vm1, %v2350_v18, %v625_v10 }
 0x12e   : > { %v688_v3 = vsel %vm421_vm1, %v2339_v4, %v631_v0  ;;  %v682_v31 = vsel %vm421_vm1, %v2362_v45, %v627_v20 }
 0x12f   : > { %v712_v5 = vsel %vm698_vm4, %v688_v3, %v661_v55 }
 0x130   : > { %v737_v7 = vunpack.c.l.b16 %v712_v5 }
 0x132   : > { %v742_v8 = vpack.c.b16 %v737_v7, %v736_v6 }
 0x134   : > { %1847 = vmatmul.msk.bf16.vlgmr.msra.gmra.mxu2 %vm749_vm5, %v742_v8  ;;  %v623_v9 = vpop.permute.xlu1 %622 }
 0x135   : > { %v633_v11 = vpop.permute.xlu0 %632  ;;  %v621_v15 = vpop.permute.xlu2 %620 }
 0x136   : > { %v691_v12 = vsel %vm421_vm1, %v2330_v52, %v633_v11  ;;  %v676_v52 = vsel %vm421_vm1, %v2328_v47, %v623_v9  ;;  %v673_v29 = vsel %vm421_vm1, %v2369_v2, %v621_v15 }
 0x137   : > { %v714_v4 = vsel %vm698_vm4, %v691_v12, %v663_v57 }
 0x138   : > { %v738_v21 = vunpack.c.l.b16 %v714_v4 }
 0x13a   : > { %v800_v53 = vpack.c.b16 %v738_v21, %v737_v7 }
 0x13c   : > { %v655_v13 = vpop.permute.xlu1 %654 }
 0x13d   : > { %v665_v17 = vpop.permute.xlu0 %664  ;;  %v706_v32 = vsel %vm698_vm4, %v679_v62, %v655_v13  ;;  %v637_v44 = vpop.permute.xlu2 %636 }
 0x13e   : > { %v716_v19 = vsel %vm698_vm4, %v694_v14, %v665_v17  ;;  %v734_v37 = vunpack.c.l.b16 %v706_v32  ;;  %v697_v48 = vsel %vm421_vm1, %v2376_v22, %v637_v44  ;;  %v2049_v14 = vld [vmem:[%s2773_s2] ss:$0 sm:$0xff] }
 0x13f   : > { %v739_v23 = vunpack.c.l.b16 %v716_v19 }
 0x141   : > { %v743_v25 = vpack.c.b16 %v739_v23, %v738_v21 }
 0x144   : > { %1848 = vmatmul.msk.bf16.gmra.mxu2 %vm749_vm5, %v743_v25  ;;  %v619_v26 = vpop.permute.xlu1 %618 }
 0x145   : > { %v653_v27 = vpop.permute.xlu0 %652  ;;  %v670_v2 = vsel %vm421_vm1, %v2358_v42, %v619_v26 }
 0x146   : > { %v704_v28 = vsel %vm698_vm4, %v676_v52, %v653_v27 }
 0x147   : > { %v733_v35 = vunpack.c.l.b16 %v704_v28 }
 0x149   : > { %v798_v40 = vpack.c.b16 %v734_v37, %v733_v35 }
 0x14c   : > { %v651_v30 = vpop.permute.xlu1 %650 }
 0x14d   : > { %v657_v33 = vpop.permute.xlu0 %656  ;;  %v702_v34 = vsel %vm698_vm4, %v673_v29, %v651_v30 }
 0x14e   : > { %v708_v47 = vsel %vm698_vm4, %v682_v31, %v657_v33  ;;  %v732_v36 = vunpack.c.l.b16 %v702_v34 }
 0x14f   : > { %v735_v16 = vunpack.c.l.b16 %v708_v47 }
 0x150   : > { %v740_v38 = vpack.c.b16 %v733_v35, %v732_v36 }
 0x151   : > { %v799_v18 = vpack.c.b16 %v736_v6, %v735_v16  ;;  %v741_v42 = vpack.c.b16 %v735_v16, %v734_v37 }
 0x152   : > { %1845 = vmatmul.msk.bf16.vlgmr.msra.gmra.mxu0 %vm749_vm5, %v740_v38 }
 0x153   : > { %1855 = vmatmul.msk.bf16.vlgmr.msra.gmra.mxu3 %vm749_vm5, %v799_v18 }
 0x154   : > { %1863 = vmatmul.msk.bf16.vlgmr.msrb.gmra.mxu2 %vm749_vm5, %v798_v40 }
 0x155   : > { %v649_v45 = vpop.permute.xlu0 %648 }
 0x156   : > { %v700_v41 = vsel %vm698_vm4, %v670_v2, %v649_v45 }
 0x157   : > { %v796_v43 = vunpack.c.l.b16 %v700_v41 }
 0x159   : > { %v797_v46 = vpack.c.b16 %v732_v36, %v796_v43  ;;  %v2133_v43 = vmov 64.0  }
 0x15a   : > { %2055 = vrcp.f32 %v2133_v43 }
 0x15b   : > { %1853 = vmatmul.msk.bf16.vlgmr.msra.gmra.mxu1 %vm749_vm5, %v797_v46 }
 0x15d   : > { %v667_v49 = vpop.permute.xlu0 %666 }
 0x15e   : > { %v718_v50 = vsel %vm698_vm4, %v697_v48, %v667_v49 }
 0x15f   : > { %v854_v51 = vunpack.c.l.b16 %v718_v50 }
 0x160   : > { %v2056_v50 = vpop.eup %2055 }
 0x161   : > { %v855_v54 = vpack.c.b16 %v854_v51, %v739_v23  ;;  %vm945_vm7 = vweird.f32 %v2056_v50 }
 0x162   : > { %1846 = vmatmul.msk.bf16.gmra.mxu0 %vm749_vm5, %v741_v42 }
 0x163   : > { %1856 = vmatmul.msk.bf16.gmra.mxu3 %vm749_vm5, %v800_v53 }
 0x164   : > { %1864 = vmatmul.msk.bf16.gmra.mxu2 %vm749_vm5, %v799_v18 }
 0x16b   : > { %1854 = vmatmul.msk.bf16.gmra.mxu1 %vm749_vm5, %v798_v40 }
 0x174   : > { %1865 = vmatmul.msk.bf16.gmra.mxu2 %vm749_vm5, %v800_v53 }
 0x184   : > { %1866 = vmatmul.msk.bf16.gmra.mxu2 %vm749_vm5, %v855_v54 }
 0x1b7   : > { %v785_v22 = vpop.f32.mrf.mxu2 }
 0x1bf   : > { %v787_v55 = vpop.f32.mrf.mxu2 }
 0x1c7   : > { %v790_v56 = vpop.f32.mrf.mxu2 }
 0x1cf   : > { %v792_v57 = vpop.f32.mrf.mxu2  ;;  %v775_v58 = vpop.f32.mrf.mxu0 }
 0x1d6   : > { %v840_v39 = vpop.f32.mrf.mxu3 }
 0x1d7   : > { %v876_v59 = vpop.f32.mrf.mxu2  ;;  %v777_v61 = vpop.f32.mrf.mxu0  ;;  %v841_v19 = vadd.f32 %v840_v39, %v785_v22  ;;  %v941_v22 = vmul.f32 64.0, %v2056_v50 }
 0x1d8   : > { %v830_v60 = vpop.f32.mrf.mxu1 }
 0x1d9   : > { %v831_v8 = vadd.f32 %v830_v60, %v775_v58 }
 0x1db   : > { %v896_v13 = vadd.f32 %v876_v59, %v831_v8  ;;  %v942_v59 = vsub.f32 1.0, %v941_v22 }
 0x1dd   : > { %v908_v26 = vadd.f32 %v2049_v14, %v896_v13 }
 0x1de   : > { %v842_v23 = vpop.f32.mrf.mxu3 }
 0x1df   : > { %v878_v63 = vpop.f32.mrf.mxu2  ;;  %v780_v1 = vpop.f32.mrf.mxu0  ;;  %v919_v62 = vsel %vm918_vm6, %v908_v26, 0.0  ;;  %v843_v32 = vadd.f32 %v842_v23, %v787_v55 }
 0x1e0   : > { %v832_v0 = vpop.f32.mrf.mxu1 }
 0x1e1   : > { %v833_v6 = vadd.f32 %v832_v0, %v777_v61  ;;  %v943_v61 = vmul.f32 %v2056_v50, %v942_v59  ;;  %v2051_v59 = vld [vmem:[%s2775_s4] ss:$0 sm:$0xff] }
 0x1e3   : > { %v897_v12 = vadd.f32 %v878_v63, %v833_v6 }
 0x1e5   : > { %v909_v20 = vadd.f32 %v2049_v14, %v897_v12 }
 0x1e6   : > { %v845_v16 = vpop.f32.mrf.mxu3 }
 0x1e7   : > { %v881_v3 = vpop.f32.mrf.mxu2  ;;  %v782_v11 = vpop.f32.mrf.mxu0  ;;  %v920_v52 = vsel %vm918_vm6, %v909_v20, 0.0  ;;  %v846_v45 = vadd.f32 %v845_v16, %v790_v56 }
 0x1e8   : > { %v835_v5 = vpop.f32.mrf.mxu1  ;;  %v921_v31 = vadd.f32 %v920_v52, %v919_v62 }
 0x1e9   : > { %v836_v9 = vadd.f32 %v835_v5, %v780_v1  ;;  %v944_v1 = vadd.f32 %v2056_v50, %v943_v61 }
 0x1eb   : > { %v898_v17 = vadd.f32 %v881_v3, %v836_v9  ;;  %v2467_v39 = vsel %vm945_vm7, %v2056_v50, %v944_v1 }
 0x1ed   : > { %v910_v27 = vadd.f32 %v2049_v14, %v898_v17 }
 0x1ee   : > { %v847_v48 = vpop.f32.mrf.mxu3 }
 0x1ef   : > { %v883_v7 = vpop.f32.mrf.mxu2  ;;  %v922_v29 = vsel %vm918_vm6, %v910_v27, 0.0  ;;  %v848_v42 = vadd.f32 %v847_v48, %v792_v57 }
 0x1f0   : > { %v837_v10 = vpop.f32.mrf.mxu1  ;;  %v923_v34 = vadd.f32 %v922_v29, %v921_v31 }
 0x1f1   : > { %v838_v4 = vadd.f32 %v837_v10, %v782_v11 }
 0x1f3   : > { %v899_v21 = vadd.f32 %v883_v7, %v838_v4 }
 0x1f5   : > { %v911_v28 = vadd.f32 %v2049_v14, %v899_v21 }
 0x1f7   : > { %v886_v25 = vpop.f32.mrf.mxu2  ;;  %v924_v33 = vsel %vm918_vm6, %v911_v28, 0.0 }
 0x1f8   : > { %v900_v15 = vadd.f32 %v886_v25, %v841_v19  ;;  %v925_v37 = vadd.f32 %v924_v33, %v923_v34 }
 0x1fa   : > { %v912_v30 = vadd.f32 %v2049_v14, %v900_v15 }
 0x1fc   : > { %v926_v47 = vsel %vm918_vm6, %v912_v30, 0.0 }
 0x1fd   : > { %v927_v18 = vadd.f32 %v926_v47, %v925_v37 }
 0x1ff   : > { %v888_v35 = vpop.f32.mrf.mxu2 }
 0x200   : > { %v901_v36 = vadd.f32 %v888_v35, %v843_v32 }
 0x202   : > { %v913_v38 = vadd.f32 %v2049_v14, %v901_v36 }
 0x204   : > { %v928_v40 = vsel %vm918_vm6, %v913_v38, 0.0 }
 0x205   : > { %v929_v2 = vadd.f32 %v928_v40, %v927_v18 }
 0x207   : > { %v891_v41 = vpop.f32.mrf.mxu2 }
 0x208   : > { %v902_v44 = vadd.f32 %v891_v41, %v846_v45 }
 0x20a   : > { %v914_v46 = vadd.f32 %v2049_v14, %v902_v44 }
 0x20c   : > { %v930_v49 = vsel %vm918_vm6, %v914_v46, 0.0 }
 0x20d   : > { %v931_v51 = vadd.f32 %v930_v49, %v929_v2 }
 0x20f   : > { %v893_v53 = vpop.f32.mrf.mxu2 }
 0x210   : > { %v903_v54 = vadd.f32 %v893_v53, %v848_v42  ;;  %v2050_v42 = vld [vmem:[%s2774_s3] ss:$0 sm:$0xff] }
 0x212   : > { %v915_v55 = vadd.f32 %v2049_v14, %v903_v54 }
 0x214   : > { %v932_v58 = vsel %vm918_vm6, %v915_v55, 0.0 }
 0x215   : > { %v933_v60 = vadd.f32 %v932_v58, %v931_v51 }
 0x217   : > { %v934_v56 = vrot.slane %v933_v60, 4 }
 0x219   : > { %v935_v63 = vadd.f32 %v934_v56, %v933_v60 }
 0x21b   : > { %v936_v0 = vrot.slane %v935_v63, 2 }
 0x21d   : > { %v937_v3 = vadd.f32 %v936_v0, %v935_v63 }
 0x21f   : > { %v938_v5 = vrot.slane %v937_v3, 1 }
 0x221   : > { %v939_v6 = vadd.f32 %v938_v5, %v937_v3 }
 0x223   : > { %v947_v57 = vmul.f32 %v2467_v39, %v939_v6 }
 0x225   : > { %v2470_v7 = vsub.f32 %v908_v26, %v947_v57  ;;  %v2472_v8 = vsub.f32 %v909_v20, %v947_v57  ;;  %v2474_v9 = vsub.f32 %v910_v27, %v947_v57  ;;  %v2476_v10 = vsub.f32 %v911_v28, %v947_v57 }
 0x226   : > { %v2478_v11 = vsub.f32 %v912_v30, %v947_v57  ;;  %v2480_v12 = vsub.f32 %v913_v38, %v947_v57  ;;  %v2482_v4 = vsub.f32 %v914_v46, %v947_v57  ;;  %v955_v15 = vsub.f32 %v915_v55, %v947_v57 }
 0x227   : > { %v956_v13 = vmul.f32 %v2470_v7, %v2470_v7  ;;  %v957_v14 = vmul.f32 %v2472_v8, %v2472_v8  ;;  %v958_v17 = vmul.f32 %v2474_v9, %v2474_v9  ;;  %v959_v19 = vmul.f32 %v2476_v10, %v2476_v10 }
 0x228   : > { %v960_v25 = vmul.f32 %v2478_v11, %v2478_v11  ;;  %v961_v52 = vmul.f32 %v2480_v12, %v2480_v12  ;;  %v962_v29 = vmul.f32 %v2482_v4, %v2482_v4  ;;  %v963_v32 = vmul.f32 %v955_v15, %v955_v15 }
 0x229   : > { %v964_v20 = vsel %vm918_vm6, %v956_v13, 0.0  ;;  %v965_v21 = vsel %vm918_vm6, %v957_v14, 0.0  ;;  %v967_v26 = vsel %vm918_vm6, %v958_v17, 0.0  ;;  %v969_v28 = vsel %vm918_vm6, %v959_v19, 0.0 }
 0x22a   : > { %v966_v23 = vadd.f32 %v965_v21, %v964_v20  ;;  %v971_v30 = vsel %vm918_vm6, %v960_v25, 0.0  ;;  %v973_v33 = vsel %vm918_vm6, %v961_v52, 0.0  ;;  %v975_v35 = vsel %vm918_vm6, %v962_v29, 0.0  ;;  %v1072_v52 = vld [vmem:[#allocation3 + $0x8] sm:$0x3] }
 0x22b   : > { %v977_v36 = vsel %vm918_vm6, %v963_v32, 0.0 }
 0x22c   : > { %v968_v27 = vadd.f32 %v967_v26, %v966_v23 }
 0x22e   : > { %v970_v62 = vadd.f32 %v969_v28, %v968_v27 }
 0x230   : > { %v972_v31 = vadd.f32 %v971_v30, %v970_v62  ;;  %v1101_v62 = vpack.c.bf16 %v1072_v52, %v1072_v52 }
 0x232   : > { %v974_v34 = vadd.f32 %v973_v33, %v972_v31 }
 0x234   : > { %v976_v47 = vadd.f32 %v975_v35, %v974_v34 }
 0x236   : > { %v978_v16 = vadd.f32 %v977_v36, %v976_v47 }
 0x238   : > { %v979_v37 = vrot.slane %v978_v16, 4 }
 0x23a   : > { %v980_v38 = vadd.f32 %v979_v37, %v978_v16  ;;  %v1132_v16 = vunpack.c.l.b16 %v1101_v62 }
 0x23c   : > { %v981_v18 = vrot.slane %v980_v38, 2 }
 0x23e   : > { %v982_v40 = vadd.f32 %v981_v18, %v980_v38 }
 0x240   : > { %v983_v2 = vrot.slane %v982_v40, 1 }
 0x242   : > { %v984_v45 = vadd.f32 %v983_v2, %v982_v40 }
 0x244   : > { %v985_v41 = vmul.f32 %v984_v45, %v2467_v39 }
 0x246   : > { %v986_v43 = vadd.f32 1e-05, %v985_v41 }
 0x248   : > { %2057 = vrsqrt.f32 %v986_v43  ;;  %vm993_vm10 = vweird.f32 %v986_v43 }
 0x24e   : > { %v2058_v44 = vpop.eup %2057 }
 0x24f   : > { %v988_v46 = vmul.f32 %v2058_v44, %v986_v43  ;;  %vm994_vm9 = vweird.f32 %v2058_v44 }
 0x250   : > { %vm995_vm11 = vmor %vm993_vm10, %vm994_vm9 }
 0x251   : > { %v989_v48 = vmul.f32 %v2058_v44, %v988_v46 }
 0x253   : > { %v990_v49 = vmul.f32 0.5, %v989_v48 }
 0x255   : > { %v991_v50 = vsub.f32 1.5, %v990_v49 }
 0x257   : > { %v992_v51 = vmul.f32 %v2058_v44, %v991_v50 }
 0x259   : > { %v996_v53 = vsel %vm995_vm11, %v2058_v44, %v992_v51 }
 0x25a   : > { %v997_v54 = vmul.f32 %v996_v53, %v2470_v7  ;;  %v998_v22 = vmul.f32 %v996_v53, %v2472_v8  ;;  %v999_v55 = vmul.f32 %v996_v53, %v2474_v9  ;;  %v1000_v58 = vmul.f32 %v996_v53, %v2476_v10 }
 0x25b   : > { %v1001_v60 = vmul.f32 %v996_v53, %v2478_v11  ;;  %v1002_v56 = vmul.f32 %v996_v53, %v2480_v12  ;;  %v1003_v61 = vmul.f32 %v996_v53, %v2482_v4  ;;  %v1004_v63 = vmul.f32 %v996_v53, %v955_v15  ;;  %v1071_v15 = vld [vmem:[#allocation3] sm:$0xff] }
 0x25c   : > { %v1008_v0 = vmul.f32 %v2050_v42, %v997_v54  ;;  %v1009_v1 = vmul.f32 %v2050_v42, %v998_v22  ;;  %v1010_v3 = vmul.f32 %v2050_v42, %v999_v55  ;;  %v1011_v5 = vmul.f32 %v2050_v42, %v1000_v58 }
 0x25d   : > { %v1012_v6 = vmul.f32 %v2050_v42, %v1001_v60  ;;  %v1013_v57 = vmul.f32 %v2050_v42, %v1002_v56  ;;  %v1014_v7 = vmul.f32 %v2050_v42, %v1003_v61  ;;  %v1015_v8 = vmul.f32 %v2050_v42, %v1004_v63 }
 0x25e   : > { %v1019_v9 = vadd.f32 %v2051_v59, %v1008_v0  ;;  %v1020_v10 = vadd.f32 %v2051_v59, %v1009_v1  ;;  %v1021_v11 = vadd.f32 %v2051_v59, %v1010_v3  ;;  %v1022_v12 = vadd.f32 %v2051_v59, %v1011_v5 }
 0x25f   : > { %v1023_v4 = vadd.f32 %v2051_v59, %v1012_v6  ;;  %v1024_v13 = vadd.f32 %v2051_v59, %v1013_v57  ;;  %v1025_v14 = vadd.f32 %v2051_v59, %v1014_v7  ;;  %v1026_v21 = vadd.f32 %v2051_v59, %v1015_v8 }
 0x260   : > { %v1027_v17 = vmax.f32 %v1019_v9, 0.0  ;;  %v1028_v19 = vmax.f32 %v1020_v10, 0.0  ;;  %v1029_v20 = vmax.f32 %v1021_v11, 0.0  ;;  %v1030_v23 = vmax.f32 %v1022_v12, 0.0 }
 0x261   : > { %v1031_v25 = vmax.f32 %v1023_v4, 0.0  ;;  %v1032_v26 = vmax.f32 %v1024_v13, 0.0  ;;  %v1033_v27 = vmax.f32 %v1025_v14, 0.0  ;;  %v1034_v24 = vmax.f32 %v1026_v21, 0.0 }
 0x262   : > { %1063 = vst.msk [vmem:[#allocation3 + $0x11] sm:$0xff] %vm918_vm6, %v1027_v17  ;;  %v2570_v28 = vpack.c.bf16 %v1071_v15, %v1071_v15 }
 0x263   : > { %1064 = vst.msk [vmem:[#allocation3 + $0x21] sm:$0xff] %vm918_vm6, %v1028_v19 }
 0x264   : > { %1065 = vst.msk [vmem:[#allocation3 + $0x31] sm:$0xff] %vm918_vm6, %v1029_v20  ;;  %v1131_v36 = vunpack.c.l.b16 %v2570_v28 }
 0x265   : > { %1066 = vst.msk [vmem:[#allocation3 + $0x41] sm:$0xff] %vm918_vm6, %v1030_v23 }
 0x266   : > { %1067 = vst.msk [vmem:[#allocation3 + $0x51] sm:$0xff] %vm918_vm6, %v1031_v25  ;;  %v1151_v42 = vpack.c.b16 %v1132_v16, %v1131_v36 }
 0x267   : > { %1068 = vst.msk [vmem:[#allocation3 + $0x61] sm:$0xff] %vm918_vm6, %v1032_v26 }
 0x268   : > { %1069 = vst.msk [vmem:[#allocation3 + $0x71] sm:$0xff] %vm918_vm6, %v1033_v27  ;;  %v1164_v0 = vshll.u32 %v1151_v42, 16  ;;  %v1251_v7 = vrot.slane %v1151_v42, 1  ;;  %v1162_v10 = vshrl.u32 %v1151_v42, 16  ;;  %v1089_v42 = vld [vmem:[#allocation3 + $0x90] sm:$0xff] }
 0x269   : > { %1070 = vst.msk [vmem:[#allocation3 + $0x81] sm:$0xff] %vm918_vm6, %v1034_v24  ;;  %v1073_v29 = vld [vmem:[#allocation3 + $0x10] sm:$0xff]  ;;  %v1074_v30 = vld [vmem:[#allocation3 + $0x18] sm:$0x3] }
 0x26a   : > { %v1075_v31 = vld [vmem:[#allocation3 + $0x20] sm:$0xff]  ;;  %v1076_v32 = vld [vmem:[#allocation3 + $0x28] sm:$0x3]  ;;  %v2574_v33 = vpack.c.bf16 %v1073_v29, %v1073_v29  ;;  %v1102_v34 = vpack.c.bf16 %v1074_v30, %v1074_v30  ;;  %v1166_v11 = vrot.slane %v1164_v0, 1 }
 0x26b   : > { %v2576_v35 = vpack.c.bf16 %v1075_v31, %v1075_v31  ;;  %v1103_v47 = vpack.c.bf16 %v1076_v32, %v1076_v32  ;;  %v1077_v37 = vld [vmem:[#allocation3 + $0x30] sm:$0xff]  ;;  %v1078_v38 = vld [vmem:[#allocation3 + $0x38] sm:$0x3] }
 0x26c   : > { %v1133_v18 = vunpack.c.l.b16 %v2574_v33  ;;  %v1134_v40 = vunpack.c.l.b16 %v1102_v34  ;;  %v1079_v2 = vld [vmem:[#allocation3 + $0x40] sm:$0xff]  ;;  %v1080_v45 = vld [vmem:[#allocation3 + $0x48] sm:$0x3]  ;;  %v2580_v41 = vpack.c.bf16 %v1077_v37, %v1077_v37  ;;  %v1104_v48 = vpack.c.bf16 %v1078_v38, %v1078_v38 }
 0x26d   : > { %v1135_v43 = vunpack.c.l.b16 %v2576_v35  ;;  %v1136_v44 = vunpack.c.l.b16 %v1103_v47  ;;  %v2583_v46 = vpack.c.bf16 %v1079_v2, %v1079_v2  ;;  %v1105_v50 = vpack.c.bf16 %v1080_v45, %v1080_v45  ;;  %v1081_v57 = vld [vmem:[#allocation3 + $0x50] sm:$0xff]  ;;  %v1082_v8 = vld [vmem:[#allocation3 + $0x58] sm:$0x3] }
 0x26e   : > { %v1152_v49 = vpack.c.b16 %v1134_v40, %v1133_v18  ;;  %v1137_v55 = vunpack.c.l.b16 %v2580_v41  ;;  %v1138_v56 = vunpack.c.l.b16 %v1104_v48  ;;  %v2590_v4 = vpack.c.bf16 %v1081_v57, %v1081_v57  ;;  %v1083_v21 = vld [vmem:[#allocation3 + $0x60] sm:$0xff]  ;;  %v1084_v23 = vld [vmem:[#allocation3 + $0x68] sm:$0x3] }
 0x26f   : > { %v1153_v51 = vpack.c.b16 %v1136_v44, %v1135_v43  ;;  %v1139_v54 = vunpack.c.l.b16 %v2583_v46  ;;  %v1140_v22 = vunpack.c.l.b16 %v1105_v50  ;;  %v1106_v17 = vpack.c.bf16 %v1082_v8, %v1082_v8  ;;  %v1085_v19 = vld [vmem:[#allocation3 + $0x70] sm:$0xff]  ;;  %v1086_v20 = vld [vmem:[#allocation3 + $0x78] sm:$0x3] }
 0x270   : > { %v1252_v53 = vrot.slane %v1152_v49, 1  ;;  %v1171_v60 = vshll.u32 %v1152_v49, 16  ;;  %v1154_v6 = vpack.c.b16 %v1138_v56, %v1137_v55  ;;  %v1169_v9 = vshrl.u32 %v1152_v49, 16  ;;  %v1087_v44 = vld [vmem:[#allocation3 + $0x80] sm:$0xff]  ;;  %v1088_v48 = vld [vmem:[#allocation3 + $0x88] sm:$0x3] }
 0x271   : > { %v1253_v58 = vrot.slane %v1153_v51, 1  ;;  %v1178_v59 = vshll.u32 %v1153_v51, 16  ;;  %v1176_v61 = vshrl.u32 %v1153_v51, 16  ;;  %v1155_v1 = vpack.c.b16 %v1140_v22, %v1139_v54 }
 0x272   : > { %1263 = vrot.lane.b32.xlu0 %v1252_v53, %s2134_s23  ;;  %v1173_v5 = vrot.slane %v1171_v60, 1  ;;  %v1185_v14 = vshll.u32 %v1154_v6, 16  ;;  %v1167_v25 = vor.u32 %v1166_v11, %v1162_v10  ;;  %v1141_v27 = vunpack.c.l.b16 %v2590_v4  ;;  %v1090_v53 = vld [vmem:[#allocation3 + $0x98] sm:$0x3] }
 0x273   : > { %1265 = vrot.lane.b32.xlu1 %v1253_v58, %s2134_s23  ;;  %v1180_v63 = vrot.slane %v1178_v59, 1  ;;  %v1192_v12 = vshll.u32 %v1155_v1, 16  ;;  %v2595_v15 = vpack.c.bf16 %v1085_v19, %v1085_v19  ;;  %v1108_v52 = vpack.c.bf16 %v1086_v20, %v1086_v20 }
 0x274   : > { %v1174_v13 = vor.u32 %v1173_v5, %v1169_v9  ;;  %v1187_v24 = vrot.slane %v1185_v14, 1  ;;  %v1142_v62 = vunpack.c.l.b16 %v1106_v17  ;;  %v2597_v29 = vpack.c.bf16 %v1083_v21, %v1083_v21 }
 0x275   : > { %v1181_v3 = vor.u32 %v1180_v63, %v1176_v61  ;;  %v1194_v26 = vrot.slane %v1192_v12, 1  ;;  %v1107_v30 = vpack.c.bf16 %v1084_v23, %v1084_v23  ;;  %v1190_v31 = vshrl.u32 %v1155_v1, 16 }
 0x276   : > { %v1183_v32 = vshrl.u32 %v1154_v6, 16  ;;  %v1145_v47 = vunpack.c.l.b16 %v2595_v15  ;;  %v1146_v36 = vunpack.c.l.b16 %v1108_v52  ;;  %v1156_v37 = vpack.c.b16 %v1142_v62, %v1141_v27  ;;  %v1991_v62 = vld [vmem:[%s2776_s5 + $0x50] sm:$0xff] }
 0x277   : > { %1235 = vrot.lane.b32.xlu2 %v1181_v3, %s2135_s18  ;;  %v1195_v34 = vor.u32 %v1194_v26, %v1190_v31  ;;  %v1143_v38 = vunpack.c.l.b16 %v2597_v29  ;;  %v1144_v18 = vunpack.c.l.b16 %v1107_v30  ;;  %v1254_v2 = vrot.slane %v1154_v6, 1  ;;  %v1986_v30 = vld [vmem:[%s2776_s5 + $0x28] sm:$0xff] }
 0x278   : > { %v1188_v16 = vor.u32 %v1187_v24, %v1183_v32  ;;  %v1158_v40 = vpack.c.b16 %v1146_v36, %v1145_v47  ;;  %v1199_v45 = vshll.u32 %v1156_v37, 16  ;;  %v1256_v49 = vrot.slane %v1156_v37, 1  ;;  %v1992_v24 = vld [vmem:[%s2776_s5 + $0x58] sm:$0xff]  ;;  %v1998_v31 = vld [vmem:[%s2776_s5 + $0x88] sm:$0xff]  ;;  %1511 = vmatpush.bf16.msrb.mxu0 %v1986_v30  ;;  %v1997_v47 = vld [vmem:[%s2776_s5 + $0x80] sm:$0xff] }
 0x279   : > { %v1157_v43 = vpack.c.b16 %v1144_v18, %v1143_v38  ;;  %v1255_v50 = vrot.slane %v1155_v1, 1  ;;  %v2605_v55 = vpack.c.bf16 %v1087_v44, %v1087_v44  ;;  %v1109_v58 = vpack.c.bf16 %v1088_v48, %v1088_v48  ;;  %1428 = vmatpush.bf16.msrb.mxu3 %v1992_v24  ;;  %v1990_v32 = vld [vmem:[%s2776_s5 + $0x48] sm:$0xff]  ;;  %1595 = vmatpush.bf16.msrb.mxu1 %v1998_v31  ;;  %v1989_v36 = vld [vmem:[%s2776_s5 + $0x40] sm:$0xff]  ;;  %v1983_v38 = vld [vmem:[%s2776_s5 + $0x10] sm:$0xff] }
 0x27a   : > { %1261 = vrot.lane.b32.xlu0 %v1251_v7, %s2134_s23  ;;  %v1213_v51 = vshll.u32 %v1158_v40, 16  ;;  %v1201_v54 = vrot.slane %v1199_v45, 1  ;;  %v1197_v59 = vshrl.u32 %v1156_v37, 16  ;;  %v2609_v60 = vpack.c.bf16 %v1089_v42, %v1089_v42  ;;  %v1996_v37 = vld [vmem:[%s2776_s5 + $0x78] sm:$0xff]  ;;  %v1987_v45 = vld [vmem:[%s2776_s5 + $0x30] sm:$0xff]  ;;  %v1994_v44 = vld [vmem:[%s2776_s5 + $0x68] sm:$0xff] }
 0x27b   : > { %1233 = vrot.lane.b32.xlu1 %v1174_v13, %s2135_s18  ;;  %v1206_v22 = vshll.u32 %v1157_v43, 16  ;;  %v1110_v56 = vpack.c.bf16 %v1090_v53, %v1090_v53  ;;  %v1147_v1 = vunpack.c.l.b16 %v2605_v55  ;;  %v1148_v3 = vunpack.c.l.b16 %v1109_v58  ;;  %v1988_v18 = vld [vmem:[%s2776_s5 + $0x38] sm:$0xff]  ;;  %v1993_v48 = vld [vmem:[%s2776_s5 + $0x60] sm:$0xff] }
 0x27c   : > { %v1215_v61 = vrot.slane %v1213_v51, 1  ;;  %v1202_v63 = vor.u32 %v1201_v54, %v1197_v59  ;;  %v1211_v5 = vshrl.u32 %v1158_v40, 16  ;;  %v1204_v6 = vshrl.u32 %v1157_v43, 16 }
 0x27d   : > { %v1208_v0 = vrot.slane %v1206_v22, 1  ;;  %v1149_v57 = vunpack.c.l.b16 %v2609_v60  ;;  %v1150_v7 = vunpack.c.l.b16 %v1110_v56  ;;  %v1159_v10 = vpack.c.b16 %v1148_v3, %v1147_v1  ;;  %1429 = vmatpush.bf16.msrb.mxu3 %v1991_v62  ;;  %1596 = vmatpush.bf16.msrb.mxu1 %v1997_v47 }
 0x27e   : > { %v1216_v8 = vor.u32 %v1215_v61, %v1211_v5  ;;  %v1257_v12 = vrot.slane %v1157_v43, 1  ;;  %v1258_v19 = vrot.slane %v1158_v40, 1  ;;  %v1995_v40 = vld [vmem:[%s2776_s5 + $0x70] sm:$0xff]  ;;  %v1981_v43 = vld [vmem:[%s2776_s5] sm:$0xff] }
 0x27f   : > { %1231 = vrot.lane.b32.xlu2 %v1167_v25, %s2135_s18  ;;  %v1209_v9 = vor.u32 %v1208_v0, %v1204_v6  ;;  %v1160_v11 = vpack.c.b16 %v1150_v7, %v1149_v57  ;;  %v1220_v13 = vshll.u32 %v1159_v10, 16  ;;  %v1259_v17 = vrot.slane %v1159_v10, 1 }
 0x280   : > { %v1218_v21 = vshrl.u32 %v1159_v10, 16 }
 0x281   : > { %v1227_v14 = vshll.u32 %v1160_v11, 16  ;;  %v1222_v20 = vrot.slane %v1220_v13, 1  ;;  %v1225_v23 = vshrl.u32 %v1160_v11, 16  ;;  %v1260_v52 = vrot.slane %v1160_v11, 1  ;;  %1430 = vmatpush.bf16.msrb.mxu3 %v1990_v32  ;;  %1597 = vmatpush.bf16.msrb.mxu1 %v1996_v37 }
 0x282   : > { %1239 = vrot.lane.b32.xlu0 %v1195_v34, %s2135_s18  ;;  %v1985_v34 = vld [vmem:[%s2776_s5 + $0x20] sm:$0xff] }
 0x283   : > { %1237 = vrot.lane.b32.xlu1 %v1188_v16, %s2135_s18  ;;  %v1229_v25 = vrot.slane %v1227_v14, 1  ;;  %v1223_v26 = vor.u32 %v1222_v20, %v1218_v21  ;;  %1512 = vmatpush.bf16.msrb.mxu0 %v1985_v34  ;;  %v1984_v16 = vld [vmem:[%s2776_s5 + $0x18] sm:$0xff] }
 0x285   : > { %v1230_v27 = vor.u32 %v1229_v25, %v1225_v23  ;;  %1431 = vmatpush.bf16.msrb.mxu3 %v1989_v36  ;;  %1598 = vmatpush.bf16.msrb.mxu1 %v1995_v40 }
 0x287   : > { %1267 = vrot.lane.b32.xlu2 %v1254_v2, %s2134_s23  ;;  %1513 = vmatpush.bf16.msrb.mxu0 %v1984_v16  ;;  %v1982_v2 = vld [vmem:[%s2776_s5 + $0x8] sm:$0xff] }
 0x289   : > { %1432 = vmatpush.bf16.msrb.mxu3 %v1988_v18  ;;  %1599 = vmatpush.bf16.msrb.mxu1 %v1994_v44 }
 0x28a   : > { %1271 = vrot.lane.b32.xlu0 %v1256_v49, %s2134_s23 }
 0x28b   : > { %1269 = vrot.lane.b32.xlu1 %v1255_v50, %s2134_s23  ;;  %1514 = vmatpush.bf16.msrb.mxu0 %v1983_v38 }
 0x28d   : > { %1433 = vmatpush.bf16.msrb.mxu3 %v1987_v45  ;;  %1600 = vmatpush.bf16.msrb.mxu1 %v1993_v48 }
 0x28f   : > { %1241 = vrot.lane.b32.xlu2 %v1202_v63, %s2135_s18  ;;  %1515 = vmatpush.bf16.msrb.mxu0 %v1982_v2 }
 0x292   : > { %1245 = vrot.lane.b32.xlu0 %v1216_v8, %s2135_s18 }
 0x293   : > { %1243 = vrot.lane.b32.xlu1 %v1209_v9, %s2135_s18  ;;  %1516 = vmatpush.bf16.msrb.mxu0 %v1981_v43 }
 0x297   : > { %1273 = vrot.lane.b32.xlu2 %v1257_v12, %s2134_s23 }
 0x29a   : > { %1277 = vrot.lane.b32.xlu0 %v1259_v17, %s2134_s23 }
 0x29b   : > { %1275 = vrot.lane.b32.xlu1 %v1258_v19, %s2134_s23 }
 0x29f   : > { %1247 = vrot.lane.b32.xlu2 %v1223_v26, %s2135_s18 }
 0x2a3   : > { %1249 = vrot.lane.b32.xlu1 %v1230_v27, %s2135_s18  ;;  %s354_s18 = scalar_lea.vmem %s2780_s9, %s1838_s30 }
 0x2a7   : > { %1279 = vrot.lane.b32.xlu2 %v1260_v52, %s2134_s23 }
 0x2d1   : > { %v1236_v49 = vpop.permute.xlu2 %1235 }
 0x2d2   : > { %v1289_v54 = vsel %vm918_vm6, %v2576_v35, %v1236_v49 }
 0x2d9   : > { %v1232_v42 = vpop.permute.xlu2 %1231 }
 0x2da   : > { %v1283_v53 = vsel %vm918_vm6, %v2570_v28, %v1232_v42 }
 0x2e1   : > { %v1268_v35 = vpop.permute.xlu2 %1267 }
 0x2e4   : > { %v1264_v50 = vpop.permute.xlu0 %1263 }
 0x2e5   : > { %v1266_v51 = vpop.permute.xlu1 %1265 }
 0x2e6   : > { %v1317_v58 = vsel %vm1311_vm13, %v1289_v54, %v1266_v51 }
 0x2e7   : > { %v1366_v1 = vunpack.c.l.b16 %v1317_v58 }
 0x2e9   : > { %v1242_v13 = vpop.permute.xlu2 %1241 }
 0x2ea   : > { %v1298_v20 = vsel %vm918_vm6, %v2590_v4, %v1242_v13 }
 0x2ec   : > { %v1262_v22 = vpop.permute.xlu0 %1261 }
 0x2ed   : > { %v1313_v59 = vsel %vm1311_vm13, %v1283_v53, %v1262_v22  ;;  %v1234_v56 = vpop.permute.xlu1 %1233 }
 0x2ee   : > { %v1456_v61 = vunpack.c.l.b16 %v1313_v59  ;;  %v1286_v63 = vsel %vm918_vm6, %v2574_v33, %v1234_v56 }
 0x2ef   : > { %v1315_v0 = vsel %vm1311_vm13, %v1286_v63, %v1264_v50 }
 0x2f0   : > { %v1365_v3 = vunpack.c.l.b16 %v1315_v0 }
 0x2f1   : > { %v1274_v25 = vpop.permute.xlu2 %1273 }
 0x2f2   : > { %v1373_v28 = vpack.c.b16 %v1366_v1, %v1365_v3  ;;  %v1457_v5 = vpack.c.b16 %v1365_v3, %v1456_v61 }
 0x2f4   : > { %1903 = vmatmul.msk.bf16.vlgmr.msrb.gmra.mxu3 %vm1413_vm14, %v1373_v28  ;;  %1931 = vmatmul.msk.bf16.vlgmr.msrb.gmra.mxu0 %vm1413_vm14, %v1457_v5  ;;  %v1240_v57 = vpop.permute.xlu0 %1239 }
 0x2f5   : > { %v1238_v6 = vpop.permute.xlu1 %1237  ;;  %v1295_v10 = vsel %vm918_vm6, %v2583_v46, %v1240_v57 }
 0x2f6   : > { %v1292_v7 = vsel %vm918_vm6, %v2580_v41, %v1238_v6 }
 0x2f7   : > { %v1319_v8 = vsel %vm1311_vm13, %v1292_v7, %v1268_v35  ;;  %v2052_v7 = vld [vmem:[%s2777_s6] ss:$0 sm:$0xff] }
 0x2f8   : > { %v1367_v33 = vunpack.c.l.b16 %v1319_v8 }
 0x2f9   : > { %v1248_v32 = vpop.permute.xlu2 %1247 }
 0x2fa   : > { %v1458_v9 = vpack.c.b16 %v1367_v33, %v1366_v1  ;;  %v1307_v47 = vsel %vm918_vm6, %v2605_v55, %v1248_v32 }
 0x2fc   : > { %1971 = vmatmul.msk.bf16.vlgmr.msrb.gmra.mxu1 %vm1413_vm14, %v1458_v9  ;;  %v1272_v17 = vpop.permute.xlu0 %1271 }
 0x2fd   : > { %v1270_v11 = vpop.permute.xlu1 %1269  ;;  %v1323_v41 = vsel %vm1311_vm13, %v1298_v20, %v1272_v17 }
 0x2fe   : > { %v1321_v12 = vsel %vm1311_vm13, %v1295_v10, %v1270_v11  ;;  %v1369_v23 = vunpack.c.l.b16 %v1323_v41 }
 0x2ff   : > { %v1368_v14 = vunpack.c.l.b16 %v1321_v12 }
 0x301   : > { %v1374_v19 = vpack.c.b16 %v1368_v14, %v1367_v33  ;;  %v1459_v26 = vpack.c.b16 %v1369_v23, %v1368_v14  ;;  %v1280_v18 = vpop.permute.xlu2 %1279 }
 0x304   : > { %1904 = vmatmul.msk.bf16.gmra.mxu3 %vm1413_vm14, %v1374_v19  ;;  %1932 = vmatmul.msk.bf16.gmra.mxu0 %vm1413_vm14, %v1458_v9  ;;  %v1246_v52 = vpop.permute.xlu0 %1245 }
 0x305   : > { %v1244_v21 = vpop.permute.xlu1 %1243  ;;  %v1304_v62 = vsel %vm918_vm6, %v2595_v15, %v1246_v52 }
 0x306   : > { %v1301_v46 = vsel %vm918_vm6, %v2597_v29, %v1244_v21 }
 0x307   : > { %v1325_v27 = vsel %vm1311_vm13, %v1301_v46, %v1274_v25 }
 0x308   : > { %v1370_v24 = vunpack.c.l.b16 %v1325_v27 }
 0x30a   : > { %v1375_v30 = vpack.c.b16 %v1370_v24, %v1369_v23 }
 0x30c   : > { %1972 = vmatmul.msk.bf16.gmra.mxu1 %vm1413_vm14, %v1459_v26  ;;  %v1278_v34 = vpop.permute.xlu0 %1277 }
 0x30d   : > { %v1276_v4 = vpop.permute.xlu1 %1275  ;;  %v1329_v16 = vsel %vm1311_vm13, %v1307_v47, %v1278_v34 }
 0x30e   : > { %v1327_v31 = vsel %vm1311_vm13, %v1304_v62, %v1276_v4  ;;  %v1372_v15 = vunpack.c.l.b16 %v1329_v16 }
 0x30f   : > { %v1371_v29 = vunpack.c.l.b16 %v1327_v31 }
 0x311   : > { %v1460_v36 = vpack.c.b16 %v1371_v29, %v1370_v24  ;;  %v1376_v40 = vpack.c.b16 %v1372_v15, %v1371_v29 }
 0x314   : > { %1905 = vmatmul.msk.bf16.gmra.mxu3 %vm1413_vm14, %v1375_v30  ;;  %1933 = vmatmul.msk.bf16.gmra.mxu0 %vm1413_vm14, %v1459_v26 }
 0x315   : > { %v1250_v37 = vpop.permute.xlu1 %1249 }
 0x316   : > { %v1310_v38 = vsel %vm918_vm6, %v2609_v60, %v1250_v37 }
 0x317   : > { %v1331_v2 = vsel %vm1311_vm13, %v1310_v38, %v1280_v18 }
 0x318   : > { %v1552_v45 = vunpack.c.l.b16 %v1331_v2 }
 0x31a   : > { %v1553_v55 = vpack.c.b16 %v1552_v45, %v1372_v15 }
 0x31c   : > { %1973 = vmatmul.msk.bf16.gmra.mxu1 %vm1413_vm14, %v1460_v36 }
 0x324   : > { %1906 = vmatmul.msk.bf16.gmra.mxu3 %vm1413_vm14, %v1376_v40  ;;  %1934 = vmatmul.msk.bf16.gmra.mxu0 %vm1413_vm14, %v1460_v36 }
 0x32c   : > { %1974 = vmatmul.msk.bf16.gmra.mxu1 %vm1413_vm14, %v1553_v55 }
 0x371   : > { %v1518_v43 = vpop.f32.mrf.mxu0 }
 0x377   : > { %v1435_v44 = vpop.f32.mrf.mxu3 }
 0x378   : > { %v1519_v1 = vadd.f32 %v1518_v43, %v1435_v44 }
 0x379   : > { %v1520_v48 = vpop.f32.mrf.mxu0  ;;  %v1602_v49 = vpop.f32.mrf.mxu1 }
 0x37a   : > { %v1622_v57 = vadd.f32 %v1602_v49, %v1519_v1 }
 0x37c   : > { %v1634_v13 = vadd.f32 %v2052_v7, %v1622_v57 }
 0x37e   : > { %v1644_v25 = vsel %vm918_vm6, %v1634_v13, 0.0 }
 0x37f   : > { %v1437_v50 = vpop.f32.mrf.mxu3 }
 0x380   : > { %v1521_v0 = vadd.f32 %v1520_v48, %v1437_v50 }
 0x381   : > { %v1523_v51 = vpop.f32.mrf.mxu0  ;;  %v1604_v42 = vpop.f32.mrf.mxu1 }
 0x382   : > { %v1623_v5 = vadd.f32 %v1604_v42, %v1521_v0 }
 0x384   : > { %v1635_v9 = vadd.f32 %v2052_v7, %v1623_v5 }
 0x386   : > { %v1645_v20 = vsel %vm918_vm6, %v1635_v9, 0.0 }
 0x387   : > { %v1440_v60 = vpop.f32.mrf.mxu3  ;;  %v1646_v24 = vadd.f32 %v1645_v20, %v1644_v25 }
 0x388   : > { %v1524_v3 = vadd.f32 %v1523_v51, %v1440_v60 }
 0x389   : > { %v1525_v53 = vpop.f32.mrf.mxu0  ;;  %v1607_v54 = vpop.f32.mrf.mxu1 }
 0x38a   : > { %v1624_v8 = vadd.f32 %v1607_v54, %v1524_v3 }
 0x38c   : > { %v1636_v14 = vadd.f32 %v2052_v7, %v1624_v8 }
 0x38e   : > { %v1647_v26 = vsel %vm918_vm6, %v1636_v14, 0.0 }
 0x38f   : > { %v1442_v22 = vpop.f32.mrf.mxu3  ;;  %v1648_v30 = vadd.f32 %v1647_v26, %v1646_v24 }
 0x390   : > { %v1526_v35 = vadd.f32 %v1525_v53, %v1442_v22 }
 0x391   : > { %v1528_v58 = vpop.f32.mrf.mxu0  ;;  %v1609_v59 = vpop.f32.mrf.mxu1 }
 0x392   : > { %v1625_v10 = vadd.f32 %v1609_v59, %v1526_v35 }
 0x394   : > { %v1637_v41 = vadd.f32 %v2052_v7, %v1625_v10 }
 0x396   : > { %v1649_v4 = vsel %vm918_vm6, %v1637_v41, 0.0 }
 0x397   : > { %v1445_v56 = vpop.f32.mrf.mxu3  ;;  %v1650_v32 = vadd.f32 %v1649_v4, %v1648_v30 }
 0x398   : > { %v1529_v33 = vadd.f32 %v1528_v58, %v1445_v56 }
 0x399   : > { %v1612_v61 = vpop.f32.mrf.mxu1  ;;  %v1530_v63 = vpop.f32.mrf.mxu0 }
 0x39a   : > { %v1626_v17 = vadd.f32 %v1612_v61, %v1529_v33 }
 0x39c   : > { %v1638_v27 = vadd.f32 %v2052_v7, %v1626_v17 }
 0x39e   : > { %v1651_v31 = vsel %vm918_vm6, %v1638_v27, 0.0 }
 0x39f   : > { %v1447_v28 = vpop.f32.mrf.mxu3  ;;  %v1652_v37 = vadd.f32 %v1651_v31, %v1650_v32 }
 0x3a0   : > { %v1531_v11 = vadd.f32 %v1530_v63, %v1447_v28 }
 0x3a1   : > { %v1614_v6 = vpop.f32.mrf.mxu1  ;;  %v1533_v12 = vpop.f32.mrf.mxu0 }
 0x3a2   : > { %v1627_v21 = vadd.f32 %v1614_v6, %v1531_v11 }
 0x3a4   : > { %v1639_v62 = vadd.f32 %v2052_v7, %v1627_v21 }
 0x3a6   : > { %v1653_v36 = vsel %vm918_vm6, %v1639_v62, 0.0 }
 0x3a7   : > { %v1450_v19 = vpop.f32.mrf.mxu3  ;;  %v1654_v40 = vadd.f32 %v1653_v36, %v1652_v37  ;;  %v2053_v36 = vld [vmem:[%s2778_s7] ss:$0 sm:$0xff] }
 0x3a8   : > { %v1534_v23 = vadd.f32 %v1533_v12, %v1450_v19 }
 0x3a9   : > { %v1617_v46 = vpop.f32.mrf.mxu1  ;;  %v1535_v34 = vpop.f32.mrf.mxu0 }
 0x3aa   : > { %v1628_v52 = vadd.f32 %v1617_v46, %v1534_v23 }
 0x3ac   : > { %v1640_v29 = vadd.f32 %v2052_v7, %v1628_v52 }
 0x3ae   : > { %v1655_v38 = vsel %vm918_vm6, %v1640_v29, 0.0 }
 0x3af   : > { %v1452_v47 = vpop.f32.mrf.mxu3  ;;  %v1656_v45 = vadd.f32 %v1655_v38, %v1654_v40 }
 0x3b0   : > { %v1536_v16 = vadd.f32 %v1535_v34, %v1452_v47 }
 0x3b1   : > { %v1619_v15 = vpop.f32.mrf.mxu1 }
 0x3b2   : > { %v1629_v18 = vadd.f32 %v1619_v15, %v1536_v16 }
 0x3b4   : > { %v1641_v2 = vadd.f32 %v2052_v7, %v1629_v18  ;;  %v2054_v18 = vld [vmem:[%s2779_s8] ss:$0 sm:$0xff] }
 0x3b6   : > { %v1657_v55 = vsel %vm918_vm6, %v1641_v2, 0.0 }
 0x3b7   : > { %v1658_v43 = vadd.f32 %v1657_v55, %v1656_v45 }
 0x3b9   : > { %v1659_v44 = vrot.slane %v1658_v43, 4 }
 0x3bb   : > { %v1660_v48 = vadd.f32 %v1659_v44, %v1658_v43 }
 0x3bd   : > { %v1661_v49 = vrot.slane %v1660_v48, 2 }
 0x3bf   : > { %v1662_v50 = vadd.f32 %v1661_v49, %v1660_v48 }
 0x3c1   : > { %v1663_v51 = vrot.slane %v1662_v50, 1 }
 0x3c3   : > { %v1664_v42 = vadd.f32 %v1663_v51, %v1662_v50 }
 0x3c5   : > { %v1665_v60 = vmul.f32 %v1664_v42, %v2467_v39 }
 0x3c7   : > { %v1666_v53 = vsub.f32 %v1634_v13, %v1665_v60  ;;  %v1667_v54 = vsub.f32 %v1635_v9, %v1665_v60  ;;  %v1668_v22 = vsub.f32 %v1636_v14, %v1665_v60  ;;  %v1669_v58 = vsub.f32 %v1637_v41, %v1665_v60 }
 0x3c8   : > { %v1670_v59 = vsub.f32 %v1638_v27, %v1665_v60  ;;  %v1671_v0 = vsub.f32 %v1639_v62, %v1665_v60  ;;  %v1672_v35 = vsub.f32 %v1640_v29, %v1665_v60  ;;  %v1673_v8 = vsub.f32 %v1641_v2, %v1665_v60 }
 0x3c9   : > { %v1674_v56 = vmul.f32 %v1666_v53, %v1666_v53  ;;  %v1675_v61 = vmul.f32 %v1667_v54, %v1667_v54  ;;  %v1676_v63 = vmul.f32 %v1668_v22, %v1668_v22  ;;  %v1677_v1 = vmul.f32 %v1669_v58, %v1669_v58 }
 0x3ca   : > { %v1678_v6 = vmul.f32 %v1670_v59, %v1670_v59  ;;  %v1679_v33 = vmul.f32 %v1671_v0, %v1671_v0  ;;  %v1680_v11 = vmul.f32 %v1672_v35, %v1672_v35  ;;  %v1681_v14 = vmul.f32 %v1673_v8, %v1673_v8 }
 0x3cb   : > { %v1682_v3 = vsel %vm918_vm6, %v1674_v56, 0.0  ;;  %v1683_v28 = vsel %vm918_vm6, %v1675_v61, 0.0  ;;  %v1685_v57 = vsel %vm918_vm6, %v1676_v63, 0.0  ;;  %v1687_v9 = vsel %vm918_vm6, %v1677_v1, 0.0 }
 0x3cc   : > { %v1684_v5 = vadd.f32 %v1683_v28, %v1682_v3  ;;  %v1689_v12 = vsel %vm918_vm6, %v1678_v6, 0.0  ;;  %v1691_v17 = vsel %vm918_vm6, %v1679_v33, 0.0  ;;  %v1693_v20 = vsel %vm918_vm6, %v1680_v11, 0.0 }
 0x3cd   : > { %v1695_v21 = vsel %vm918_vm6, %v1681_v14, 0.0 }
 0x3ce   : > { %v1686_v7 = vadd.f32 %v1685_v57, %v1684_v5 }
 0x3d0   : > { %v1688_v10 = vadd.f32 %v1687_v9, %v1686_v7 }
 0x3d2   : > { %v1690_v13 = vadd.f32 %v1689_v12, %v1688_v10 }
 0x3d4   : > { %v1692_v19 = vadd.f32 %v1691_v17, %v1690_v13 }
 0x3d6   : > { %v1694_v41 = vadd.f32 %v1693_v20, %v1692_v19 }
 0x3d8   : > { %v1696_v23 = vadd.f32 %v1695_v21, %v1694_v41 }
 0x3da   : > { %v1697_v46 = vrot.slane %v1696_v23, 4 }
 0x3dc   : > { %v1698_v25 = vadd.f32 %v1697_v46, %v1696_v23 }
 0x3de   : > { %v1699_v26 = vrot.slane %v1698_v25, 2 }
 0x3e0   : > { %v1700_v27 = vadd.f32 %v1699_v26, %v1698_v25 }
 0x3e2   : > { %v1701_v52 = vrot.slane %v1700_v27, 1 }
 0x3e4   : > { %v1702_v24 = vadd.f32 %v1701_v52, %v1700_v27 }
 0x3e6   : > { %v1703_v4 = vmul.f32 %v1702_v24, %v2467_v39 }
 0x3e8   : > { %v1704_v62 = vadd.f32 1e-05, %v1703_v4 }
 0x3ea   : > { %2059 = vrsqrt.f32 %v1704_v62  ;;  %vm1711_vm0 = vweird.f32 %v1704_v62 }
 0x3f0   : > { %v2060_v30 = vpop.eup %2059 }
 0x3f1   : > { %v1706_v31 = vmul.f32 %v2060_v30, %v1704_v62  ;;  %vm1712_vm15 = vweird.f32 %v2060_v30 }
 0x3f2   : > { %vm1713_vm1 = vmor %vm1711_vm0, %vm1712_vm15 }
 0x3f3   : > { %v1707_v29 = vmul.f32 %v2060_v30, %v1706_v31 }
 0x3f5   : > { %v1708_v32 = vmul.f32 0.5, %v1707_v29 }
 0x3f7   : > { %v1709_v34 = vsub.f32 1.5, %v1708_v32 }
 0x3f9   : > { %v1710_v47 = vmul.f32 %v2060_v30, %v1709_v34 }
 0x3fb   : > { %v1714_v39 = vsel %vm1713_vm1, %v2060_v30, %v1710_v47 }
 0x3fc   : > { %v1715_v16 = vmul.f32 %v1714_v39, %v1666_v53  ;;  %v1716_v37 = vmul.f32 %v1714_v39, %v1667_v54  ;;  %v1717_v15 = vmul.f32 %v1714_v39, %v1668_v22  ;;  %v1718_v38 = vmul.f32 %v1714_v39, %v1669_v58 }
 0x3fd   : > { %v1719_v40 = vmul.f32 %v1714_v39, %v1670_v59  ;;  %v1720_v2 = vmul.f32 %v1714_v39, %v1671_v0  ;;  %v1721_v45 = vmul.f32 %v1714_v39, %v1672_v35  ;;  %v1722_v55 = vmul.f32 %v1714_v39, %v1673_v8 }
 0x3fe   : > { %v1726_v43 = vmul.f32 %v2053_v36, %v1715_v16  ;;  %v1727_v44 = vmul.f32 %v2053_v36, %v1716_v37  ;;  %v1728_v48 = vmul.f32 %v2053_v36, %v1717_v15  ;;  %v1729_v49 = vmul.f32 %v2053_v36, %v1718_v38 }
 0x3ff   : > { %v1730_v50 = vmul.f32 %v2053_v36, %v1719_v40  ;;  %v1731_v51 = vmul.f32 %v2053_v36, %v1720_v2  ;;  %v1732_v42 = vmul.f32 %v2053_v36, %v1721_v45  ;;  %v1733_v60 = vmul.f32 %v2053_v36, %v1722_v55 }
 0x400   : > { %v1737_v53 = vadd.f32 %v2054_v18, %v1726_v43  ;;  %v1738_v54 = vadd.f32 %v2054_v18, %v1727_v44  ;;  %v1739_v22 = vadd.f32 %v2054_v18, %v1728_v48  ;;  %v1740_v58 = vadd.f32 %v2054_v18, %v1729_v49 }
 0x401   : > { %v1741_v59 = vadd.f32 %v2054_v18, %v1730_v50  ;;  %v1742_v56 = vadd.f32 %v2054_v18, %v1731_v51  ;;  %v1743_v61 = vadd.f32 %v2054_v18, %v1732_v42  ;;  %v1744_v3 = vadd.f32 %v2054_v18, %v1733_v60 }
 0x402   : > { %v1745_v63 = vmax.f32 %v1737_v53, 0.0  ;;  %v1746_v0 = vmax.f32 %v1738_v54, 0.0  ;;  %v1747_v1 = vmax.f32 %v1739_v22, 0.0  ;;  %v1748_v28 = vmax.f32 %v1740_v58, 0.0 }
 0x403   : > { %v1749_v5 = vmax.f32 %v1741_v59, 0.0  ;;  %v1750_v35 = vmax.f32 %v1742_v56, 0.0  ;;  %v1751_v6 = vmax.f32 %v1743_v61, 0.0  ;;  %v1752_v57 = vmax.f32 %v1744_v3, 0.0 }
 0x404   : > { %1753 = vst.msk [vmem:[%s354_s18] sm:$0xff] %vm918_vm6, %v1745_v63 }
 0x405   : > { %1754 = vst.msk [vmem:[%s354_s18 + $0x8] sm:$0xff] %vm918_vm6, %v1746_v0 }
 0x406   : > { %1755 = vst.msk [vmem:[%s354_s18 + $0x10] sm:$0xff] %vm918_vm6, %v1747_v1 }
 0x407   : > { %1756 = vst.msk [vmem:[%s354_s18 + $0x18] sm:$0xff] %vm918_vm6, %v1748_v28 }
 0x408   : > { %1757 = vst.msk [vmem:[%s354_s18 + $0x20] sm:$0xff] %vm918_vm6, %v1749_v5 }
 0x409   : > { %1758 = vst.msk [vmem:[%s354_s18 + $0x28] sm:$0xff] %vm918_vm6, %v1750_v35 }
 0x40a   : > { %1759 = vst.msk [vmem:[%s354_s18 + $0x30] sm:$0xff] %vm918_vm6, %v1751_v6 }
 0x40b   : > { %1760 = vst.msk [vmem:[%s354_s18 + $0x38] sm:$0xff] %vm918_vm6, %v1752_v57 }
 0x40c PF: > { %p19_p7 = scmp.ge.s32.totalorder %s2206_s14, 4   ;;  %s2784_s30 = smov %s2117_s10 }
 0x40d   : > { %s2785_s10 = smov %s2121_s11  ;;  %s2786_s11 = smov %s2216_s17 }
 0x40e   : > { %s2787_s12 = smov %s2206_s14  ;;  %21 = sbr.rel (!%p19_p7) target bundleno = 3 (0x3), region = 104 }
 0x413   :  { %1783 = vsyncpa [#allocation5], 1 }
 0x414   :  { %1785 = vsyncpa [#allocation5 + $0x1], 1 }

</bundles_post_ra>
